<compile_context>
chip_gen: v7x
topology: tpu7x:2x2x1
jax: 0.10.0
libtpu: 0.0.40
codegen_flags: <defaults>
</compile_context>

<pallas_src>
import jax
import jax.numpy as jnp
from jax.experimental import pallas as pl
from jax.experimental.pallas import tpu as pltpu

C_IN = 768    # conv1 input channels
C_MID = 192   # conv1 output / conv2 input channels
C_OUT = 256   # conv2 output channels (== residual x0 channels)


def _update_kernel(x_ref, w1_ref, b1_ref, w2_ref, b2_ref, x0_ref, o_ref):
    # x_ref:  (768, TS)  f32   channels x spatial (spatial on lanes)
    # w1_ref: (192, 768) bf16  conv1 weight, PyTorch-native (Cout, Cin)
    # b1_ref: (192, 1)   f32
    # w2_ref: (256, 192) bf16  conv2 weight (Cout, Cin)
    # b2_ref: (256, 1)   f32
    # x0_ref: (256, TS)  f32   residual
    # o_ref:  (256, TS)  f32
    # bf16 operands on the MXU, f32 accumulation; biases added post-accumulate.
    h = jnp.dot(w1_ref[...], x_ref[...].astype(jnp.bfloat16),
                preferred_element_type=jnp.float32)
    h = jnp.maximum(h + b1_ref[...], 0.0)                 # bias + ReLU
    y = jnp.dot(w2_ref[...], h.astype(jnp.bfloat16),
                preferred_element_type=jnp.float32)
    o_ref[...] = (y + b2_ref[...] + x0_ref[...]).astype(o_ref.dtype)


def _vmem_capacity_bytes():
    """Physical VMEM per TensorCore; conservative fallback if query unavailable."""
    try:
        return int(pltpu.get_tpu_info().vmem_capacity_bytes)
    except Exception:
        return 64 * 1024 * 1024   # assume v7x-sized (smallest) VMEM


def _pick_tile_s(S, max_tile):
    """Largest multiple-of-128 divisor of S that is <= max_tile (S % 128 == 0)."""
    assert S % 128 == 0
    m = S // 128
    for d in range(min(max_tile // 128, m), 0, -1):
        if m % d == 0:
            return 128 * d
    return 128


def update_resnet_forward(x, x0, w1, b1, w2, b2, *, tile_s=None):
    """x: (N, 768, H, W), x0: (N, 256, H, W)  ->  (N, 256, H, W).

    w1: (192, 768), b1: (192,), w2: (256, 192), b2: (256,)
    (weights in PyTorch's native (Cout, Cin) order, 1x1 kernel dims squeezed).
    """
    N, C, H, W = x.shape
    assert C == C_IN and x0.shape == (N, C_OUT, H, W)
    S = H * W

    # Free reshapes (no data movement): NCHW -> (N, C, S), spatial on lanes.
    x3 = x.reshape(N, C_IN, S).astype(jnp.float32)
    x03 = x0.reshape(N, C_OUT, S).astype(jnp.float32)
    # Weights cast to bf16 once (MXU operands); biases stay f32.
    w1m = w1.reshape(C_MID, C_IN).astype(jnp.bfloat16)
    w2m = w2.reshape(C_OUT, C_MID).astype(jnp.bfloat16)
    b1c = b1.reshape(C_MID, 1).astype(jnp.float32)
    b2c = b2.reshape(C_OUT, 1).astype(jnp.float32)

    # Lane alignment: pad the spatial axis to a multiple of 128 so every tile
    # satisfies the (8,128) rule; avoids full-extent fallback blocks that could
    # exceed the v7x 64 MiB VMEM for large, non-aligned H*W.
    S_pad = ((S + 127) // 128) * 128
    if S_pad != S:
        pad = ((0, 0), (0, 0), (0, S_pad - S))
        x3 = jnp.pad(x3, pad)
        x03 = jnp.pad(x03, pad)

    # Generation-aware tiling: bigger tiles on 128 MiB VMEM parts (v5e/v6e),
    # capped tiles + capped scoped limit on v7x (64 MiB per TensorCore).
    vmem_cap = _vmem_capacity_bytes()
    if vmem_cap >= 100 * 1024 * 1024:
        max_tile, vmem_limit = 4096, 96 * 1024 * 1024   # v5e / v6e
    else:
        max_tile, vmem_limit = 2048, 48 * 1024 * 1024   # v7x
    if tile_s is None:
        tile_s = _pick_tile_s(S_pad, max_tile)
    assert S_pad % tile_s == 0 and tile_s % 128 == 0

    # Both grid axes are independent -> "parallel"; on v7x the 2 TensorCores
    # split the N x (S/tile) grid, which is balanced for N >= 2 or >= 2 tiles.
    grid = (N, S_pad // tile_s)

    cost = pl.CostEstimate(
        flops=2 * N * S_pad * (C_IN * C_MID + C_MID * C_OUT),
        transcendentals=0,
        bytes_accessed=(4 * N * S_pad * (C_IN + 2 * C_OUT)
                        + 2 * (C_IN * C_MID + C_MID * C_OUT)
                        + 4 * (C_MID + C_OUT)),
    )

    out3 = pl.pallas_call(
        _update_kernel,
        out_shape=jax.ShapeDtypeStruct((N, C_OUT, S_pad), jnp.float32),
        grid_spec=pltpu.PrefetchScalarGridSpec(
            num_scalar_prefetch=0,
            grid=grid,
            in_specs=[
                # x tile: batch dim squeezed, channels on sublanes, spatial on lanes
                pl.BlockSpec((None, C_IN, tile_s), lambda n, s: (n, 0, s)),
                # Weights / biases are VMEM-resident (constant index_map, never
                # re-fetched).  pl.Buffered(1) would drop their redundant second
                # buffer but saves <0.5 MiB at bf16, so it is not worth the risk.
                pl.BlockSpec((C_MID, C_IN), lambda n, s: (0, 0)),    # w1 (bf16)
                pl.BlockSpec((C_MID, 1), lambda n, s: (0, 0)),       # b1
                pl.BlockSpec((C_OUT, C_MID), lambda n, s: (0, 0)),   # w2 (bf16)
                pl.BlockSpec((C_OUT, 1), lambda n, s: (0, 0)),       # b2
                pl.BlockSpec((None, C_OUT, tile_s), lambda n, s: (n, 0, s)),  # x0 tile
            ],
            out_specs=pl.BlockSpec((None, C_OUT, tile_s), lambda n, s: (n, 0, s)),
        ),
        compiler_params=pltpu.CompilerParams(
            dimension_semantics=("parallel", "parallel"),
            vmem_limit_bytes=vmem_limit,
        ),
        cost_estimate=cost,
    )(x3, w1m, b1c, w2m, b2c, x03)

    # TODO(synk): if x0 is donatable, input_output_aliases={5: 0} would reuse its
    # HBM buffer for the output (same shape/dtype); skipped to avoid requiring
    # donation from the caller.

    if S_pad != S:
        out3 = out3[:, :, :S]
    return out3.reshape(N, C_OUT, H, W)  # free reshape back to NCHW


if __name__ == "__main__":
    key = jax.random.PRNGKey(0)
    k_x, k_x0, k_w1, k_b1, k_w2, k_b2 = jax.random.split(key, 6)

    # Small batch/spatial; channel counts fixed by the module definition.
    N, H, W = 2, 16, 16
    x = jax.random.normal(k_x, (N, C_IN, H, W), dtype=jnp.float32)
    x0 = jax.random.normal(k_x0, (N, C_OUT, H, W), dtype=jnp.float32)

    # Deterministic synthetic parameters (PyTorch-native (Cout, Cin) order).
    w1 = jax.random.normal(k_w1, (C_MID, C_IN), dtype=jnp.float32) * 0.02
    b1 = jax.random.normal(k_b1, (C_MID,), dtype=jnp.float32) * 0.02
    w2 = jax.random.normal(k_w2, (C_OUT, C_MID), dtype=jnp.float32) * 0.02
    b2 = jax.random.normal(k_b2, (C_OUT,), dtype=jnp.float32) * 0.02

    out = jax.block_until_ready(update_resnet_forward(x, x0, w1, b1, w2, b2))
    assert out.shape == (N, C_OUT, H, W)

    S = H * W
    xr = x.reshape(N, C_IN, S)

    # Reference 1: identical math to the kernel (bf16 operands, f32 accumulate).
    h = jnp.einsum("oc,ncs->nos", w1.astype(jnp.bfloat16), xr.astype(jnp.bfloat16),
                   preferred_element_type=jnp.float32)
    h = jnp.maximum(h + b1[None, :, None], 0.0)
    y = jnp.einsum("oc,ncs->nos", w2.astype(jnp.bfloat16), h.astype(jnp.bfloat16),
                   preferred_element_type=jnp.float32)
    ref_bf16 = (y + b2[None, :, None] + x0.reshape(N, C_OUT, S)).reshape(N, C_OUT, H, W)
    assert jnp.allclose(out, ref_bf16, atol=1e-2, rtol=1e-2)

    # Reference 2 (loose): full-f32 semantics of the original PyTorch module.
    hf = jnp.maximum(
        jnp.einsum("oc,ncs->nos", w1, xr,
                   precision=jax.lax.Precision.HIGHEST) + b1[None, :, None], 0.0)
    yf = (jnp.einsum("oc,ncs->nos", w2, hf, precision=jax.lax.Precision.HIGHEST)
          + b2[None, :, None] + x0.reshape(N, C_OUT, S))
    ref_f32 = yf.reshape(N, C_OUT, H, W)
    assert jnp.allclose(out, ref_f32, atol=7e-2, rtol=7e-2)

    print("KERNEL_OK")
</pallas_src>

<mosaic_0001>
module attributes {stable_mosaic.version = 11 : i64} {
  func.func @_update_kernel(%arg0: i32, %arg1: i32, %arg2: memref<1x768x256xf32, #tpu.memory_space<vmem>>, %arg3: memref<192x768xbf16, #tpu.memory_space<vmem>>, %arg4: memref<192x1xf32, #tpu.memory_space<vmem>>, %arg5: memref<256x192xbf16, #tpu.memory_space<vmem>>, %arg6: memref<256x1xf32, #tpu.memory_space<vmem>>, %arg7: memref<1x256x256xf32, #tpu.memory_space<vmem>>, %arg8: memref<1x256x256xf32, #tpu.memory_space<vmem>>) attributes {dimension_semantics = [#tpu.dimension_semantics<parallel>, #tpu.dimension_semantics<parallel>], iteration_bounds = array<i64: 2, 1>, scalar_prefetch = 0 : i64, scratch_operands = 0 : i64, tpu.core_type = #tpu.core_type<tc>, window_params = [{transform_indices = @transform_0, window_bounds = array<i64: 1, 768, 256>}, {pipeline_mode = #tpu.pipeline_mode<synchronous>, transform_indices = @transform_1, window_bounds = array<i64: 192, 768>}, {pipeline_mode = #tpu.pipeline_mode<synchronous>, transform_indices = @transform_2, window_bounds = array<i64: 192, 1>}, {pipeline_mode = #tpu.pipeline_mode<synchronous>, transform_indices = @transform_3, window_bounds = array<i64: 256, 192>}, {pipeline_mode = #tpu.pipeline_mode<synchronous>, transform_indices = @transform_4, window_bounds = array<i64: 256, 1>}, {transform_indices = @transform_5, window_bounds = array<i64: 1, 256, 256>}, {transform_indices = @transform_6, window_bounds = array<i64: 1, 256, 256>}]} {
    %c0 = arith.constant 0 : index
    %c0_0 = arith.constant 0 : index
    %0 = vector.load %arg3[%c0, %c0_0] : memref<192x768xbf16, #tpu.memory_space<vmem>>, vector<192x768xbf16>
    %c0_1 = arith.constant 0 : index
    %c0_2 = arith.constant 0 : index
    %c0_3 = arith.constant 0 : index
    %1 = vector.load %arg2[%c0_1, %c0_2, %c0_3] : memref<1x768x256xf32, #tpu.memory_space<vmem>>, vector<1x768x256xf32>
    %2 = vector.shape_cast %1 : vector<1x768x256xf32> to vector<768x256xf32>
    %3 = arith.truncf %2 : vector<768x256xf32> to vector<768x256xbf16>
    %cst = arith.constant dense<0.000000e+00> : vector<192x256xf32>
    %4 = tpu.matmul %0, %3, %cst {dimension_numbers = #tpu.dot_dimension_numbers<[1], [0], [0], [1], [0, 0, 1, 1], [], []>} : vector<192x768xbf16>, vector<768x256xbf16>, vector<192x256xf32> -> vector<192x256xf32>
    %c0_4 = arith.constant 0 : index
    %c0_5 = arith.constant 0 : index
    %5 = vector.load %arg4[%c0_4, %c0_5] : memref<192x1xf32, #tpu.memory_space<vmem>>, vector<192x1xf32>
    %6 = vector.broadcast %5 : vector<192x1xf32> to vector<192x256xf32>
    %7 = arith.addf %4, %6 : vector<192x256xf32>
    %cst_6 = arith.constant 0.000000e+00 : f32
    %8 = vector.broadcast %cst_6 : f32 to vector<192x256xf32>
    %9 = arith.maximumf %7, %8 : vector<192x256xf32>
    %c0_7 = arith.constant 0 : index
    %c0_8 = arith.constant 0 : index
    %10 = vector.load %arg5[%c0_7, %c0_8] : memref<256x192xbf16, #tpu.memory_space<vmem>>, vector<256x192xbf16>
    %11 = arith.truncf %9 : vector<192x256xf32> to vector<192x256xbf16>
    %cst_9 = arith.constant dense<0.000000e+00> : vector<256x256xf32>
    %12 = tpu.matmul %10, %11, %cst_9 {dimension_numbers = #tpu.dot_dimension_numbers<[1], [0], [0], [1], [0, 0, 1, 1], [], []>} : vector<256x192xbf16>, vector<192x256xbf16>, vector<256x256xf32> -> vector<256x256xf32>
    %c0_10 = arith.constant 0 : index
    %c0_11 = arith.constant 0 : index
    %13 = vector.load %arg6[%c0_10, %c0_11] : memref<256x1xf32, #tpu.memory_space<vmem>>, vector<256x1xf32>
    %14 = vector.broadcast %13 : vector<256x1xf32> to vector<256x256xf32>
    %15 = arith.addf %12, %14 : vector<256x256xf32>
    %c0_12 = arith.constant 0 : index
    %c0_13 = arith.constant 0 : index
    %c0_14 = arith.constant 0 : index
    %16 = vector.load %arg7[%c0_12, %c0_13, %c0_14] : memref<1x256x256xf32, #tpu.memory_space<vmem>>, vector<1x256x256xf32>
    %17 = vector.shape_cast %16 : vector<1x256x256xf32> to vector<256x256xf32>
    %18 = arith.addf %15, %17 : vector<256x256xf32>
    %c0_15 = arith.constant 0 : index
    %c0_16 = arith.constant 0 : index
    %c0_17 = arith.constant 0 : index
    %19 = vector.load %arg8[%c0_15, %c0_16, %c0_17] : memref<1x256x256xf32, #tpu.memory_space<vmem>>, vector<1x256x256xf32>
    %20 = vector.shape_cast %19 : vector<1x256x256xf32> to vector<256x256xf32>
    %21 = vector.shape_cast %18 : vector<256x256xf32> to vector<1x256x256xf32>
    tpu.vector_store %arg8[%c0_15, %c0_16, %c0_17], %21 {strides = array<i32>} : memref<1x256x256xf32, #tpu.memory_space<vmem>>, vector<1x256x256xf32>,
    return
  }
  func.func @transform_0(%arg0: i32, %arg1: i32) -> (i32, i32, i32) {
    %c0_i32 = arith.constant 0 : i32
    %c0_i32_0 = arith.constant 0 : i32
    return %arg0, %c0_i32, %arg1 : i32, i32, i32
  }
  func.func @transform_1(%arg0: i32, %arg1: i32) -> (i32, i32) {
    %c0_i32 = arith.constant 0 : i32
    %c0_i32_0 = arith.constant 0 : i32
    %c0_i32_1 = arith.constant 0 : i32
    return %c0_i32, %c0_i32_0 : i32, i32
  }
  func.func @transform_2(%arg0: i32, %arg1: i32) -> (i32, i32) {
    %c0_i32 = arith.constant 0 : i32
    %c0_i32_0 = arith.constant 0 : i32
    %c0_i32_1 = arith.constant 0 : i32
    return %c0_i32, %c0_i32_0 : i32, i32
  }
  func.func @transform_3(%arg0: i32, %arg1: i32) -> (i32, i32) {
    %c0_i32 = arith.constant 0 : i32
    %c0_i32_0 = arith.constant 0 : i32
    %c0_i32_1 = arith.constant 0 : i32
    return %c0_i32, %c0_i32_0 : i32, i32
  }
  func.func @transform_4(%arg0: i32, %arg1: i32) -> (i32, i32) {
    %c0_i32 = arith.constant 0 : i32
    %c0_i32_0 = arith.constant 0 : i32
    %c0_i32_1 = arith.constant 0 : i32
    return %c0_i32, %c0_i32_0 : i32, i32
  }
  func.func @transform_5(%arg0: i32, %arg1: i32) -> (i32, i32, i32) {
    %c0_i32 = arith.constant 0 : i32
    %c0_i32_0 = arith.constant 0 : i32
    return %arg0, %c0_i32, %arg1 : i32, i32, i32
  }
  func.func @transform_6(%arg0: i32, %arg1: i32) -> (i32, i32, i32) {
    %c0_i32 = arith.constant 0 : i32
    %c0_i32_0 = arith.constant 0 : i32
    return %arg0, %c0_i32, %arg1 : i32, i32, i32
  }
}

</mosaic_0001>

<bundles_post_ra>
// kernel: tpu_custom_call.1
= control target key start
LH: loop header
LB: loop body
LE: loop exit
PB: predicated region body
PF: predicated region fallthrough
CT: control target
= control target key end

     0   :  { %s4653_s0 = inlined_call_operand.hbm [shape: f32[2,768,256], index: 0, kind: input, shape index: {}]   ;;  %s4654_s1 = inlined_call_operand.hbm [shape: bf16[192,768], index: 1, kind: input, shape index: {}]   ;;  %s4655_s2 = inlined_call_operand.vmem [shape: f32[192,1], index: 2, kind: input, shape index: {}]   ;;  %s4656_s3 = inlined_call_operand.vmem [shape: bf16[256,192], index: 3, kind: input, shape index: {}]   ;;  %s4657_s4 = inlined_call_operand.vmem [shape: f32[256,1], index: 4, kind: input, shape index: {}]   ;;  %s4658_s5 = inlined_call_operand.hbm [shape: f32[2,256,256], index: 5, kind: input, shape index: {}]   ;;  %s4659_s6 = inlined_call_operand.hbm [shape: f32[2,256,256], index: 6, kind: output, shape index: {}]  }
   0x1   :  { %4675 = sst [smem:[#allocation20_spill]] %s4653_s0 }
   0x2   :  { %11 = vsyncpa [#allocation3], 0 }
   0x3   :  { %13 = vsyncpa [#allocation3 + $0x1], 0 }
   0x4   :  { %14 = vsyncpa [#allocation6], 0 }
   0x5   :  { %15 = vsyncpa [#allocation4], 0 }
   0x6   :  { %17 = vsyncpa [#allocation4 + $0x1], 0  ;;  %s3469_s21 = smov 0   ;;  %s3471_s22 = smov 0  }
   0x7   :  { %s3473_s23 = smov 0   ;;  %s3475_s24 = smov 0  }
   0x8   :  { %s3477_s25 = smov 0   ;;  %s3479_s26 = smov 0  }
   0x9 LB: > { %4676 = sst [smem:[#allocation13_spill]] %s3409_s23  ;;  %s35_s27 = sadd.s32 1, %s3417_s25  ;;  %s3421_s26 = sphi %s3479_s26, %s23_s26   ;;  %s3417_s25 = sphi %s3477_s25, %s4708_s25   ;;  %s3413_s24 = sphi %s3475_s24, %s4707_s24   ;;  %s3409_s23 = sphi %s3473_s23, %s4706_s23   ;;  %s3405_s22 = sphi %s3471_s22, %s4710_s22   ;;  %s3401_s21 = sphi %s3469_s21, %s4709_s21  }
   0xa   : > { %4677 = sst [smem:[#allocation14_spill]] %s3417_s25  ;;  %s44_s28 = sadd.s32 1, %s3409_s23 }
   0xb   : > { %p37_p0 = scmp.ge.s32.totalorder %s35_s27, 2  ;;  %p51_p1 = scmp.ne.s32.totalorder %s3409_s23, %s3405_s22 }
   0xc   : > { %p52_p2 = scmp.eq.s32.totalorder %s3421_s26, 0  ;;  %p3026_p5 = scmp.lt.s32.totalorder %s3421_s26, 2 }
   0xd   : > { %s4712_s27 = smov (%p37_p0, %s35_s27), 0  ;;  %s243_s30 = sand.u32 1, %s3421_s26  }
   0xe   : > { %4678 = sst [smem:[#allocation15_spill]] %s4712_s27  ;;  %p53_p4 = por %p52_p2, %p51_p1 }
   0xf   : > { %s39_s29 = ssub.s32 %s3417_s25, %s4712_s27  ;;  %s245_s7 = sand.u32 1, %s3409_s23  }
  0x10   : > { %p42_p6 = scmp.eq.s32.totalorder %s39_s29, 0  ;;  %s2998_s8 = smul.u32 24576, %s3417_s25 }
  0x11   : > { %s2997_s10 = smul.u32 1536, %s245_s7  ;;  %s4680_s0 = sld [smem:[#allocation20_spill]] }
  0x12   : > { %s3517_s9 = scalar_select %p42_p6, %s3409_s23, %s44_s28  }
  0x13   : > { %p3524_p7 = pnand %p3026_p5, %p53_p4  ;;  %s247_s15 = scalar_lea.vmem [#allocation2], %s2997_s10 }
  0x14   : > { %4679 = sst [smem:[#allocation16_spill]] %s3517_s9  ;;  %s256_s16 = sshll.u32 %s247_s15, 4  ;;  %s3528_s16 = int_to_ptr.vmem [resolvable:$true] %s256_s16 }
  0x15   : > { %s4681_s14 = scalar_select %p3524_p7, 1, 0 }
  0x16   : > { %s3530_s17 = sshll.u32 %s245_s7, 9  ;;  %s3532_s18 = scalar_lea.sflag [#allocation3], %s243_s30 }
  0x17   : > { %s3522_s13 = scalar_lea.hbm %s4680_s0, %s2998_s8  ;;  %p4666_p9 = pneg %p3524_p7 }
  0x18   : > { %s3243_s19 = scalar_lea.hbm %s3522_s13, 24576  ;;  %s3248_s29 = scalar_lea.hbm %s4680_s0, 49152 }
  0x19   : > { %p3244_p8 = scmp.ne.s32.totalorder %s3522_s13, %s3243_s19  ;;  %p3249_p12 = scmp.lt.u32.totalorder %s3522_s13, %s4680_s0 }
  0x1a   : > { %p3250_p13 = scmp.lt.u32.totalorder %s3248_s29, %s3243_s19  ;;  %p3252_p2 = scmp.lt.u32.totalorder %s3243_s19, %s3522_s13 }
  0x1b   : > { %p3246_p10 = pnand %p4666_p9, %p3244_p8 }
  0x1c   : > { %p3251_p0 = por %p3250_p13, %p3249_p12 }
  0x1d   : > { %p3247_p11 = pneg %p3246_p10 }
  0x1e   : > { %p3253_p4 = por %p3252_p2, %p3251_p0 }
  0x20   : > { %p3254_p5 = pnand %p3253_p4, %p3247_p11 }
  0x22   : > { %3257 = shalt.err (!%p3254_p5)
}
  0x23   : > { %s3258_s30 = scalar_lea.vmem %s3528_s16, 24576  ;;  %s3423_s7 = smov [#allocation2]  }
  0x24   : > { %p3259_p6 = scmp.ne.s32.totalorder %s3528_s16, %s3258_s30  ;;  %s3263_s11 = sshll.u32 %s3423_s7, 4  ;;  %s3264_s11 = int_to_ptr.vmem [resolvable:$false] %s3263_s11 }
  0x25   : > { %s3265_s12 = scalar_lea.vmem %s3264_s11, 49152  ;;  %p3266_p3 = scmp.lt.s32.totalorder %s3528_s16, %s3264_s11 }
  0x26   : > { %p3261_p8 = pnand %p3259_p6, %p4666_p9  ;;  %p3267_p12 = scmp.lt.s32.totalorder %s3265_s12, %s3258_s30 }
  0x28   : > { %p3262_p10 = pneg %p3261_p8  ;;  %p3268_p13 = por %p3267_p12, %p3266_p3 }
  0x2a   : > { %p3269_p0 = pnand %p3268_p13, %p3262_p10 }
  0x2c   : > { %3272 = shalt.err (!%p3269_p0)
}
  0x2d   : > { %s4660_s15 = smov 256   ;;  %s4661_s19 = smov 16  }
  0x2e   : > { %3017 = dma.hbm_to_vmem [thread:$0]  (!%p3524_p7), %s3522_s13, 24576, %s3528_s16, %s3532_s18, %s4660_s15, %s4660_s15, %s4661_s19  }
  0x2f   : > { %s3564_s20 = sadd.s32 4294967295, %s3421_s26   ;;  %s2682_s28 = sadd.s32 4294967294, %s3421_s26  }
  0x30   : > { %p57_p3 = scmp.ne.s32.totalorder %s3405_s22, %s3401_s21  ;;  %p4665_p11 = scmp.eq.s32.totalorder %s3564_s20, 0 }
  0x31   : > { %p195_p2 = scmp.eq.s32.totalorder %s3564_s20, 1  ;;  %p201_p4 = scmp.eq.s32.totalorder %s2682_s28, 1 }
  0x32   : > { %p2683_p5 = scmp.ge.s32.totalorder %s3421_s26, 1  ;;  %p3574_p6 = por %p4665_p11, %p57_p3 }
  0x33   : > { %p3581_p8 = por %p195_p2, %p51_p1  ;;  %p3585_p10 = por %p201_p4, %p57_p3 }
  0x34   : > { %s4682_s29 = scalar_select %p3574_p6, 1, 0 }
  0x35   : > { %s4683_s13 = scalar_select %p3581_p8, 1, 0 }
  0x36   : > { %s4684_s16 = scalar_select %p3585_p10, 1, 0 }
  0x37   : > { %p208_p12 = scmp.lt.s32.totalorder %s3421_s26, 3  ;;  %s3426_s10 = smov [#allocation5]  }
  0x38   : > { %s220_s30 = sshll.u32 %s3426_s10, 4  ;;  %s2819_s7 = sshll.u32 %s3417_s25, 13  ;;  %s3594_s30 = int_to_ptr.vmem [resolvable:$true] %s220_s30 }
  0x39   : > { %p3590_p13 = pnand %p2683_p5, %p208_p12  ;;  %s270_s11 = scalar_lea.vmem [#allocation7], %s3530_s17 }
  0x3a   : > { %s279_s12 = sshll.u32 %s270_s11, 4  ;;  %s3609_s0 = scalar_lea.hbm %s4658_s5, %s2819_s7  ;;  %s3611_s12 = int_to_ptr.vmem [resolvable:$true] %s279_s12 }
  0x3b   : > { %s4685_s8 = scalar_select %p3590_p13, 1, 0 }
  0x3c   : > { %p3010_p0 = pneg %p3590_p13  ;;  %s3273_s9 = scalar_lea.hbm %s4654_s1, 9216 }
  0x3d   : > { %p3274_p3 = scmp.ne.s32.totalorder %s4654_s1, %s3273_s9  ;;  %p3280_p12 = scmp.lt.u32.totalorder %s3273_s9, %s4654_s1 }
  0x3e   : > { %p3602_p1 = pnand %p3010_p0, %p4665_p11 }
  0x40   : > { %p3275_p2 = pneg %p3602_p1 }
  0x42   : > { %p3276_p4 = pnand %p3275_p2, %p3274_p3 }
  0x44   : > { %p3277_p5 = pneg %p3276_p4 }
  0x46   : > { %p3282_p0 = pnand %p3280_p12, %p3277_p5 }
  0x48   : > { %3285 = shalt.err (!%p3282_p0)
}
  0x49   : > { %s3286_s15 = scalar_lea.vmem %s3594_s30, 9216  ;;  %p3294_p8 = scmp.lt.s32.totalorder %s3594_s30, %s3594_s30 }
  0x4a   : > { %p3287_p11 = scmp.ne.s32.totalorder %s3594_s30, %s3286_s15  ;;  %p3295_p6 = scmp.lt.s32.totalorder %s3286_s15, %s3286_s15 }
  0x4c   : > { %p3289_p9 = pnand %p3287_p11, %p3275_p2  ;;  %p3296_p13 = por %p3295_p6, %p3294_p8 }
  0x4e   : > { %p3290_p10 = pneg %p3289_p9 }
  0x50   : > { %p3297_p7 = pnand %p3296_p13, %p3290_p10 }
  0x52   : > { %3300 = shalt.err (!%p3297_p7)
}
  0x53   : > { %s3427_s25 = smov 384   ;;  %s3428_s23 = smov 24  }
  0x54   : > { %3013 = dma.hbm_to_vmem [thread:$0]  (!%p3602_p1), %s4654_s1, 9216, %s3594_s30, [#allocation6], %s3427_s25, %s3427_s25, %s3428_s23  }
  0x55   : > { %s3301_s19 = scalar_lea.hbm %s3609_s0, 8192  ;;  %p4687_p11 = scmp.ne.s32.totalorder %s4681_s14, 0 }
  0x56   : > { %p3302_p9 = scmp.ne.s32.totalorder %s3609_s0, %s3301_s19  ;;  %s3306_s17 = scalar_lea.hbm %s4658_s5, 16384 }
  0x57   : > { %p4688_p6 = pneg %p4687_p11  ;;  %p3307_p10 = scmp.lt.u32.totalorder %s3609_s0, %s4658_s5 }
  0x58   : > { %p3308_p13 = scmp.lt.u32.totalorder %s3306_s17, %s3301_s19  ;;  %p3310_p2 = scmp.lt.u32.totalorder %s3301_s19, %s3609_s0 }
  0x59   : > { %p3304_p8 = pnand %p3302_p9, %p4688_p6 }
  0x5a   : > { %p3309_p3 = por %p3308_p13, %p3307_p10 }
  0x5b   : > { %p3305_p7 = pneg %p3304_p8 }
  0x5c   : > { %p3311_p4 = por %p3310_p2, %p3309_p3 }
  0x5e   : > { %p3312_p5 = pnand %p3311_p4, %p3305_p7 }
  0x60   : > { %3315 = shalt.err (!%p3312_p5)
}
  0x61   : > { %s3316_s30 = scalar_lea.vmem %s3611_s12, 8192  ;;  %p4689_p12 = pmov %p4688_p6 }
  0x62   : > { %p3317_p1 = scmp.ne.s32.totalorder %s3611_s12, %s3316_s30  ;;  %s3429_s28 = smov [#allocation7]  }
  0x63   : > { %s3321_s25 = sshll.u32 %s3429_s28, 4  ;;  %s3322_s25 = int_to_ptr.vmem [resolvable:$false] %s3321_s25 }
  0x64   : > { %p3319_p0 = pnand %p3317_p1, %p4689_p12  ;;  %s3323_s23 = scalar_lea.vmem %s3322_s25, 16384 }
  0x65   : > { %p3324_p6 = scmp.lt.s32.totalorder %s3611_s12, %s3322_s25  ;;  %p3325_p8 = scmp.lt.s32.totalorder %s3323_s23, %s3316_s30 }
  0x66   : > { %p3320_p9 = pneg %p3319_p0 }
  0x67   : > { %p3326_p10 = por %p3325_p8, %p3324_p6 }
  0x69   : > { %p3327_p13 = pnand %p3326_p10, %p3320_p9 }
  0x6b   : > { %3330 = shalt.err (!%p3327_p13)
}
  0x6c   : > { %s4690_s27 = smov 16   ;;  %s4691_s9 = smov 256  }
  0x6d   : > { %3020 = dma.hbm_to_vmem [thread:$0]  (!%p4687_p11), %s3609_s0, 8192, %s3611_s12, %s3532_s18, %s4691_s9, %s4691_s9, %s4690_s27  }
  0x6e   : > { %p4692_p7 = scmp.ne.s32.totalorder %s4685_s8, 0 }
  0x70   : > { %291 = sbr.rel (%p4692_p7) target bundleno = 1016 (0x3f8), region = 44 }
  0x77   : > { %s293_s19 = sand.u32 1, %s3564_s20   ;;  %s3665_s7 = sand.u32 1, %s3405_s22  }
  0x78   : > { %s2999_s10 = smul.u32 1536, %s3665_s7  ;;  %s294_s17 = scalar_lea.sflag [#allocation3], %s293_s19 }
  0x79   : > { %p4693_p3 = scmp.ne.s32.totalorder %s4682_s29, 0 }
  0x7a   : > { %s3668_s14 = scalar_lea.vmem [#allocation2], %s2999_s10 }
  0x7b   : > { %3384 = dma.done.wait (%p4693_p3), %s294_s17, 24576  }
  0x7c   : > { %3386 = vsyncadd (%p4693_p3), %s294_s17, 4294942720  ;;  %p4694_p11 = scmp.eq.s32.totalorder %s3564_s20, 0 }
  0x7e   : > { %3388 = dma.done.wait (%p4694_p11), [#allocation6], 9216   ;;  %p4695_p2 = pmov %p4694_p11 }
  0x7f   : > { %s2692_s0 = sshll.u32 %s3665_s7, 9 }
  0x80   : > { %3390 = vsyncadd (%p4695_p2), [#allocation6], 4294958080  ;;  %s3681_s18 = scalar_lea.vmem [#allocation7], %s2692_s0 }
  0x81   : > { %3392 = dma.done.wait (%p4693_p3), %s294_s17, 8192  }
  0x82   : > { %3394 = vsyncadd (%p4693_p3), %s294_s17, 4294959104  ;;  %v421_v0 = vld [vmem:[%s3668_s14 + $0x8] sm:$0xff]  ;;  %v423_v1 = vld [vmem:[%s3668_s14 + $0x18] sm:$0xff]  ;;  %vm2111_vm0 = vcmask 523264   ;;  %s4471_s29 = scalar_lea.vmem [#allocation8], %s2692_s0  ;;  %s2820_s0 = sshll.u32 %s3413_s24, 13 }
  0x83   : > { %v420_v2 = vld [vmem:[%s3668_s14] sm:$0xff]  ;;  %v613_v3 = vpack.c.bf16 %v423_v1, %v421_v0  ;;  %v422_v4 = vld [vmem:[%s3668_s14 + $0x10] sm:$0xff]  ;;  %v425_v5 = vld [vmem:[%s3668_s14 + $0x28] sm:$0xff]  ;;  %s2561_s8 = sshll.u32 %s4471_s29, 4  ;;  %s2546_s24 = scalar_lea.sflag [#allocation4], %s3665_s7  ;;  %s4601_s8 = int_to_ptr.vmem [resolvable:$true] %s2561_s8 }
  0x84   : > { %v427_v6 = vld [vmem:[%s3668_s14 + $0x38] sm:$0xff]  ;;  %v612_v7 = vpack.c.bf16 %v422_v4, %v420_v2  ;;  %v424_v9 = vld [vmem:[%s3668_s14 + $0x20] sm:$0xff]  ;;  %v426_v10 = vld [vmem:[%s3668_s14 + $0x30] sm:$0xff]  ;;  %p4702_p5 = scmp.ne.s32.totalorder %s4683_s13, 0  ;;  %s3431_s15 = smov [#allocation8]  }
  0x85   : > { %v615_v8 = vpack.c.bf16 %v427_v6, %v425_v5  ;;  %v429_v11 = vld [vmem:[%s3668_s14 + $0x48] sm:$0xff]  ;;  %1212 = vmatprep.subr.bf16.mxu0 %v613_v3  ;;  %v431_v12 = vld [vmem:[%s3668_s14 + $0x58] sm:$0xff]  ;;  %v614_v13 = vpack.c.bf16 %v426_v10, %v424_v9  ;;  %v428_v15 = vld [vmem:[%s3668_s14 + $0x40] sm:$0xff]  ;;  %s3335_s30 = sshll.u32 %s3431_s15, 4  ;;  %s3336_s30 = int_to_ptr.vmem [resolvable:$false] %s3335_s30 }
  0x86   : > { %1213 = vmatpush1.bf16.msra.mxu0 %v612_v7  ;;  %v617_v14 = vpack.c.bf16 %v431_v12, %v429_v11  ;;  %v430_v16 = vld [vmem:[%s3668_s14 + $0x50] sm:$0xff]  ;;  %v433_v17 = vld [vmem:[%s3668_s14 + $0x68] sm:$0xff]  ;;  %v435_v18 = vld [vmem:[%s3668_s14 + $0x78] sm:$0xff]  ;;  %s3337_s28 = scalar_lea.vmem %s3336_s30, 16384  ;;  %p3338_p0 = scmp.lt.s32.totalorder %s4601_s8, %s3336_s30 }
  0x87   : > { %1214 = vmatprep.subr.bf16.mxu0 %v615_v8  ;;  %v616_v19 = vpack.c.bf16 %v430_v16, %v428_v15  ;;  %v619_v20 = vpack.c.bf16 %v435_v18, %v433_v17  ;;  %v432_v21 = vld [vmem:[%s3668_s14 + $0x60] sm:$0xff]  ;;  %v434_v22 = vld [vmem:[%s3668_s14 + $0x70] sm:$0xff]  ;;  %v437_v23 = vld [vmem:[%s3668_s14 + $0x88] sm:$0xff] }
  0x88   : > { %v439_v24 = vld [vmem:[%s3668_s14 + $0x98] sm:$0xff]  ;;  %v618_v25 = vpack.c.bf16 %v434_v22, %v432_v21  ;;  %v436_v27 = vld [vmem:[%s3668_s14 + $0x80] sm:$0xff]  ;;  %v438_v28 = vld [vmem:[%s3668_s14 + $0x90] sm:$0xff] }
  0x89   : > { %v621_v26 = vpack.c.bf16 %v439_v24, %v437_v23  ;;  %v441_v29 = vld [vmem:[%s3668_s14 + $0xa8] sm:$0xff]  ;;  %v443_v30 = vld [vmem:[%s3668_s14 + $0xb8] sm:$0xff]  ;;  %v620_v31 = vpack.c.bf16 %v438_v28, %v436_v27  ;;  %v440_v33 = vld [vmem:[%s3668_s14 + $0xa0] sm:$0xff] }
  0x8a   : > { %1215 = vmatpush1.bf16.msra.mxu0 %v614_v13  ;;  %v623_v32 = vpack.c.bf16 %v443_v30, %v441_v29  ;;  %v442_v34 = vld [vmem:[%s3668_s14 + $0xb0] sm:$0xff]  ;;  %v445_v35 = vld [vmem:[%s3668_s14 + $0xc8] sm:$0xff]  ;;  %v447_v36 = vld [vmem:[%s3668_s14 + $0xd8] sm:$0xff] }
  0x8b   : > { %1216 = vmatprep.subr.bf16.mxu0 %v617_v14  ;;  %v622_v37 = vpack.c.bf16 %v442_v34, %v440_v33  ;;  %v444_v38 = vld [vmem:[%s3668_s14 + $0xc0] sm:$0xff]  ;;  %v446_v39 = vld [vmem:[%s3668_s14 + $0xd0] sm:$0xff]  ;;  %v625_v40 = vpack.c.bf16 %v447_v36, %v445_v35  ;;  %v449_v41 = vld [vmem:[%s3668_s14 + $0xe8] sm:$0xff] }
  0x8c   : > { %v451_v42 = vld [vmem:[%s3668_s14 + $0xf8] sm:$0xff]  ;;  %v624_v44 = vpack.c.bf16 %v446_v39, %v444_v38  ;;  %v448_v45 = vld [vmem:[%s3668_s14 + $0xe0] sm:$0xff]  ;;  %v450_v47 = vld [vmem:[%s3668_s14 + $0xf0] sm:$0xff] }
  0x8d   : > { %v3089_v43 = vld [vmem:[#allocation5 + $0x4] ss:$24 sps:$4 sm:$0xff]   ;;  %v627_v46 = vpack.c.bf16 %v451_v42, %v449_v41  ;;  %v453_v48 = vld [vmem:[%s3668_s14 + $0x108] sm:$0xff]  ;;  %v626_v50 = vpack.c.bf16 %v450_v47, %v448_v45  ;;  %v454_v53 = vld [vmem:[%s3668_s14 + $0x110] sm:$0xff] }
  0x8e   : > { %1217 = vmatpush1.bf16.msra.mxu0 %v616_v19  ;;  %1244 = vmatprep.mubr.bf16.mxu0 %v3089_v43  ;;  %v455_v49 = vld [vmem:[%s3668_s14 + $0x118] sm:$0xff]  ;;  %v452_v52 = vld [vmem:[%s3668_s14 + $0x100] sm:$0xff]  ;;  %v457_v54 = vld [vmem:[%s3668_s14 + $0x128] sm:$0xff] }
  0x8f   : > { %1218 = vmatprep.subr.bf16.mxu0 %v619_v20  ;;  %v629_v51 = vpack.c.bf16 %v455_v49, %v453_v48  ;;  %v459_v55 = vld [vmem:[%s3668_s14 + $0x138] sm:$0xff]  ;;  %v628_v56 = vpack.c.bf16 %v454_v53, %v452_v52  ;;  %v456_v58 = vld [vmem:[%s3668_s14 + $0x120] sm:$0xff]  ;;  %v458_v59 = vld [vmem:[%s3668_s14 + $0x130] sm:$0xff] }
  0x90   : > { %v631_v57 = vpack.c.bf16 %v459_v55, %v457_v54  ;;  %v461_v60 = vld [vmem:[%s3668_s14 + $0x148] sm:$0xff]  ;;  %v463_v61 = vld [vmem:[%s3668_s14 + $0x158] sm:$0xff]  ;;  %v630_v62 = vpack.c.bf16 %v458_v59, %v456_v58  ;;  %v460_v63 = vld [vmem:[%s3668_s14 + $0x140] sm:$0xff] }
  0x91   : > { %v462_v0 = vld [vmem:[%s3668_s14 + $0x150] sm:$0xff]  ;;  %v633_v1 = vpack.c.bf16 %v463_v61, %v461_v60  ;;  %v465_v2 = vld [vmem:[%s3668_s14 + $0x168] sm:$0xff]  ;;  %v551_v4 = vld [vmem:[%s3668_s14 + $0x418] sm:$0xff] }
  0x92   : > { %1219 = vmatpush1.bf16.msra.mxu0 %v618_v25  ;;  %v549_v3 = vld [vmem:[%s3668_s14 + $0x408] sm:$0xff]  ;;  %v467_v5 = vld [vmem:[%s3668_s14 + $0x178] sm:$0xff]  ;;  %v548_v7 = vld [vmem:[%s3668_s14 + $0x400] sm:$0xff]  ;;  %v632_v11 = vpack.c.bf16 %v462_v0, %v460_v63 }
  0x93   : > { %1220 = vmatprep.subr.bf16.mxu0 %v621_v26  ;;  %v3735_v6 = vpack.c.bf16 %v551_v4, %v549_v3  ;;  %v550_v8 = vld [vmem:[%s3668_s14 + $0x410] sm:$0xff]  ;;  %v464_v9 = vld [vmem:[%s3668_s14 + $0x160] sm:$0xff]  ;;  %v553_v12 = vld [vmem:[%s3668_s14 + $0x428] sm:$0xff]  ;;  %v635_v14 = vpack.c.bf16 %v467_v5, %v465_v2 }
  0x94   : > { %v3740_v10 = vpack.c.bf16 %v550_v8, %v548_v7  ;;  %v555_v13 = vld [vmem:[%s3668_s14 + $0x438] sm:$0xff]  ;;  %v466_v15 = vld [vmem:[%s3668_s14 + $0x170] sm:$0xff]  ;;  %v552_v17 = vld [vmem:[%s3668_s14 + $0x420] sm:$0xff] }
  0x95   : > { %2821 = vmatprep.subr.bf16.mxu1 %v3735_v6  ;;  %v3747_v16 = vpack.c.bf16 %v555_v13, %v553_v12  ;;  %v469_v18 = vld [vmem:[%s3668_s14 + $0x188] sm:$0xff]  ;;  %v471_v19 = vld [vmem:[%s3668_s14 + $0x198] sm:$0xff]  ;;  %v554_v20 = vld [vmem:[%s3668_s14 + $0x430] sm:$0xff]  ;;  %v634_v22 = vpack.c.bf16 %v466_v15, %v464_v9 }
  0x96   : > { %1221 = vmatpush1.bf16.msra.mxu0 %v620_v31  ;;  %2837 = vmatpush1.bf16.msra.mxu1 %v3740_v10  ;;  %v3754_v21 = vpack.c.bf16 %v554_v20, %v552_v17  ;;  %v557_v23 = vld [vmem:[%s3668_s14 + $0x448] sm:$0xff]  ;;  %v559_v24 = vld [vmem:[%s3668_s14 + $0x458] sm:$0xff]  ;;  %v556_v25 = vld [vmem:[%s3668_s14 + $0x440] sm:$0xff]  ;;  %v637_v26 = vpack.c.bf16 %v471_v19, %v469_v18 }
  0x97   : > { %1222 = vmatprep.subr.bf16.mxu0 %v623_v32  ;;  %2822 = vmatprep.subr.bf16.mxu1 %v3747_v16  ;;  %v468_v27 = vld [vmem:[%s3668_s14 + $0x180] sm:$0xff]  ;;  %v470_v28 = vld [vmem:[%s3668_s14 + $0x190] sm:$0xff]  ;;  %v3762_v29 = vpack.c.bf16 %v559_v24, %v557_v23  ;;  %v473_v31 = vld [vmem:[%s3668_s14 + $0x1a8] sm:$0xff] }
  0x98   : > { %v558_v30 = vld [vmem:[%s3668_s14 + $0x450] sm:$0xff]  ;;  %v475_v32 = vld [vmem:[%s3668_s14 + $0x1b8] sm:$0xff]  ;;  %v561_v34 = vld [vmem:[%s3668_s14 + $0x468] sm:$0xff]  ;;  %v636_v36 = vpack.c.bf16 %v470_v28, %v468_v27 }
  0x99   : > { %v3767_v33 = vpack.c.bf16 %v558_v30, %v556_v25  ;;  %v563_v35 = vld [vmem:[%s3668_s14 + $0x478] sm:$0xff]  ;;  %v560_v38 = vld [vmem:[%s3668_s14 + $0x460] sm:$0xff]  ;;  %v562_v39 = vld [vmem:[%s3668_s14 + $0x470] sm:$0xff] }
  0x9a   : > { %1223 = vmatpush1.bf16.msra.mxu0 %v622_v37  ;;  %2838 = vmatpush1.bf16.msra.mxu1 %v3754_v21  ;;  %v3772_v37 = vpack.c.bf16 %v563_v35, %v561_v34  ;;  %v472_v41 = vld [vmem:[%s3668_s14 + $0x1a0] sm:$0xff]  ;;  %v474_v42 = vld [vmem:[%s3668_s14 + $0x1b0] sm:$0xff]  ;;  %v3779_v43 = vpack.c.bf16 %v562_v39, %v560_v38  ;;  %v479_v45 = vld [vmem:[%s3668_s14 + $0x1d8] sm:$0xff] }
  0x9b   : > { %1224 = vmatprep.subr.bf16.mxu0 %v625_v40  ;;  %2823 = vmatprep.subr.bf16.mxu1 %v3762_v29  ;;  %v639_v40 = vpack.c.bf16 %v475_v32, %v473_v31  ;;  %v567_v47 = vld [vmem:[%s3668_s14 + $0x498] sm:$0xff]  ;;  %v564_v48 = vld [vmem:[%s3668_s14 + $0x480] sm:$0xff]  ;;  %v566_v49 = vld [vmem:[%s3668_s14 + $0x490] sm:$0xff] }
  0x9c   : > { %v478_v52 = vld [vmem:[%s3668_s14 + $0x1d0] sm:$0xff]  ;;  %v481_v55 = vld [vmem:[%s3668_s14 + $0x1e8] sm:$0xff]  ;;  %v571_v58 = vld [vmem:[%s3668_s14 + $0x4b8] sm:$0xff] }
  0x9d   : > { %v483_v59 = vld [vmem:[%s3668_s14 + $0x1f8] sm:$0xff]  ;;  %v568_v61 = vld [vmem:[%s3668_s14 + $0x4a0] sm:$0xff]  ;;  %v485_v3 = vld [vmem:[%s3668_s14 + $0x208] sm:$0xff] }
  0x9e   : > { %1225 = vmatpush1.bf16.msra.mxu0 %v624_v44  ;;  %2839 = vmatpush1.bf16.msra.mxu1 %v3767_v33  ;;  %v477_v44 = vld [vmem:[%s3668_s14 + $0x1c8] sm:$0xff]  ;;  %v480_v0 = vld [vmem:[%s3668_s14 + $0x1e0] sm:$0xff]  ;;  %v643_v2 = vpack.c.bf16 %v483_v59, %v481_v55  ;;  %v575_v7 = vld [vmem:[%s3668_s14 + $0x4d8] sm:$0xff] }
  0x9f   : > { %1226 = vmatprep.subr.bf16.mxu0 %v627_v46  ;;  %2824 = vmatprep.subr.bf16.mxu1 %v3772_v37  ;;  %v565_v46 = vld [vmem:[%s3668_s14 + $0x488] sm:$0xff]  ;;  %v641_v54 = vpack.c.bf16 %v479_v45, %v477_v44  ;;  %v487_v8 = vld [vmem:[%s3668_s14 + $0x218] sm:$0xff]  ;;  %v574_v12 = vld [vmem:[%s3668_s14 + $0x4d0] sm:$0xff] }
  0xa0   : > { %v3790_v53 = vpack.c.bf16 %v567_v47, %v565_v46  ;;  %v573_v5 = vld [vmem:[%s3668_s14 + $0x4c8] sm:$0xff]  ;;  %v484_v13 = vld [vmem:[%s3668_s14 + $0x200] sm:$0xff]  ;;  %v579_v17 = vld [vmem:[%s3668_s14 + $0x4f8] sm:$0xff]  ;;  %v645_v18 = vpack.c.bf16 %v487_v8, %v485_v3 }
  0xa1   : > { %v3814_v9 = vpack.c.bf16 %v575_v7, %v573_v5  ;;  %v577_v15 = vld [vmem:[%s3668_s14 + $0x4e8] sm:$0xff]  ;;  %v486_v19 = vld [vmem:[%s3668_s14 + $0x210] sm:$0xff]  ;;  %v491_v23 = vld [vmem:[%s3668_s14 + $0x238] sm:$0xff] }
  0xa2   : > { %1227 = vmatpush1.bf16.msra.mxu0 %v626_v50  ;;  %v638_v50 = vpack.c.bf16 %v474_v42, %v472_v41  ;;  %2840 = vmatpush1.bf16.msra.mxu1 %v3779_v43  ;;  %v489_v20 = vld [vmem:[%s3668_s14 + $0x228] sm:$0xff]  ;;  %v3828_v24 = vpack.c.bf16 %v579_v17, %v577_v15  ;;  %v576_v25 = vld [vmem:[%s3668_s14 + $0x4e0] sm:$0xff]  ;;  %v644_v30 = vpack.c.bf16 %v486_v19, %v484_v13  ;;  %v583_v34 = vld [vmem:[%s3668_s14 + $0x518] sm:$0xff] }
  0xa3   : > { %1228 = vmatprep.subr.bf16.mxu0 %v629_v51  ;;  %v476_v51 = vld [vmem:[%s3668_s14 + $0x1c0] sm:$0xff]  ;;  %2825 = vmatprep.subr.bf16.mxu1 %v3790_v53  ;;  %v3090_v28 = vld [vmem:[#allocation5 + $0x34] ss:$24 sps:$4 sm:$0xff]   ;;  %v647_v35 = vpack.c.bf16 %v491_v23, %v489_v20  ;;  %v495_v39 = vld [vmem:[%s3668_s14 + $0x258] sm:$0xff] }
  0xa4   : > { %v640_v63 = vpack.c.bf16 %v478_v52, %v476_v51  ;;  %v3087_v27 = vld [vmem:[#allocation5] ss:$24 sps:$4 sm:$0xff]   ;;  %v581_v32 = vld [vmem:[%s3668_s14 + $0x508] sm:$0xff]  ;;  %v582_v44 = vld [vmem:[%s3668_s14 + $0x510] sm:$0xff] }
  0xa5   : > { %v488_v31 = vld [vmem:[%s3668_s14 + $0x220] sm:$0xff]  ;;  %v493_v38 = vld [vmem:[%s3668_s14 + $0x248] sm:$0xff]  ;;  %v3842_v41 = vpack.c.bf16 %v583_v34, %v581_v32  ;;  %v587_v46 = vld [vmem:[%s3668_s14 + $0x538] sm:$0xff] }
  0xa6   : > { %1229 = vmatpush1.bf16.msra.mxu0 %v628_v56  ;;  %v3794_v56 = vpack.c.bf16 %v566_v49, %v564_v48  ;;  %v580_v42 = vld [vmem:[%s3668_s14 + $0x500] sm:$0xff]  ;;  %v585_v45 = vld [vmem:[%s3668_s14 + $0x528] sm:$0xff]  ;;  %v649_v48 = vpack.c.bf16 %v495_v39, %v493_v38  ;;  %v503_v7 = vld [vmem:[%s3668_s14 + $0x298] sm:$0xff] }
  0xa7   : > { %1230 = vmatprep.subr.bf16.mxu0 %v631_v57  ;;  %v569_v57 = vld [vmem:[%s3668_s14 + $0x4a8] sm:$0xff]  ;;  %v492_v49 = vld [vmem:[%s3668_s14 + $0x240] sm:$0xff]  ;;  %v3852_v52 = vpack.c.bf16 %v582_v44, %v580_v42  ;;  %v3856_v55 = vpack.c.bf16 %v587_v46, %v585_v45  ;;  %v590_v13 = vld [vmem:[%s3668_s14 + $0x550] sm:$0xff] }
  0xa8   : > { %v3800_v60 = vpack.c.bf16 %v571_v58, %v569_v57  ;;  %2841 = vmatpush1.bf16.msra.mxu1 %v3794_v56  ;;  %v497_v51 = vld [vmem:[%s3668_s14 + $0x268] sm:$0xff]  ;;  %v584_v57 = vld [vmem:[%s3668_s14 + $0x520] sm:$0xff]  ;;  %v586_v58 = vld [vmem:[%s3668_s14 + $0x530] sm:$0xff] }
  0xa9   : > { %v3092_v59 = vld [vmem:[#allocation5 + $0x30] ss:$24 sps:$4 sm:$0xff]   ;;  %v3867_v8 = vpack.c.bf16 %v586_v58, %v584_v57  ;;  %v595_v15 = vld [vmem:[%s3668_s14 + $0x578] sm:$0xff]  ;;  %v504_v38 = vld [vmem:[%s3668_s14 + $0x2a0] sm:$0xff] }
  0xaa   : > { %1231 = vmatpush1.bf16.msra.mxu0 %v630_v62  ;;  %v570_v62 = vld [vmem:[%s3668_s14 + $0x4b0] sm:$0xff]  ;;  %2826 = vmatprep.subr.bf16.mxu1 %v3800_v60  ;;  %v501_v5 = vld [vmem:[%s3668_s14 + $0x288] sm:$0xff]  ;;  %v599_v34 = vld [vmem:[%s3668_s14 + $0x598] sm:$0xff] }
  0xab   : > { %1232 = vmatprep.subr.bf16.mxu0 %v633_v1  ;;  %v482_v1 = vld [vmem:[%s3668_s14 + $0x1f0] sm:$0xff]  ;;  %v3808_v4 = vpack.c.bf16 %v570_v62, %v568_v61  ;;  %v589_v61 = vld [vmem:[%s3668_s14 + $0x548] sm:$0xff]  ;;  %v591_v62 = vld [vmem:[%s3668_s14 + $0x558] sm:$0xff]  ;;  %v653_v20 = vpack.c.bf16 %v503_v7, %v501_v5 }
  0xac   : > { %v502_v19 = vld [vmem:[%s3668_s14 + $0x290] sm:$0xff]  ;;  %v505_v23 = vld [vmem:[%s3668_s14 + $0x2a8] sm:$0xff]  ;;  %v511_v45 = vld [vmem:[%s3668_s14 + $0x2d8] sm:$0xff] }
  0xad   : > { %2842 = vmatpush1.bf16.msra.mxu1 %v3808_v4  ;;  %v597_v32 = vld [vmem:[%s3668_s14 + $0x588] sm:$0xff]  ;;  %v506_v39 = vld [vmem:[%s3668_s14 + $0x2b0] sm:$0xff]  ;;  %v603_v57 = vld [vmem:[%s3668_s14 + $0x5b8] sm:$0xff] }
  0xae   : > { %1233 = vmatpush1.bf16.msra.mxu0 %v632_v11  ;;  %v572_v11 = vld [vmem:[%s3668_s14 + $0x4c0] sm:$0xff]  ;;  %2827 = vmatprep.subr.bf16.mxu1 %v3814_v9  ;;  %v509_v44 = vld [vmem:[%s3668_s14 + $0x2c8] sm:$0xff]  ;;  %v654_v58 = vpack.c.bf16 %v506_v39, %v504_v38  ;;  %v602_v7 = vld [vmem:[%s3668_s14 + $0x5b0] sm:$0xff] }
  0xaf   : > { %1234 = vmatprep.subr.bf16.mxu0 %v635_v14  ;;  %v642_v14 = vpack.c.bf16 %v482_v1, %v480_v0  ;;  %v496_v1 = vld [vmem:[%s3668_s14 + $0x260] sm:$0xff]  ;;  %v521_v38 = vld [vmem:[%s3668_s14 + $0x328] sm:$0xff] }
  0xb0   : > { %v600_v5 = vld [vmem:[%s3668_s14 + $0x5a0] sm:$0xff] }
  0xb2   : > { %1235 = vmatpush1.bf16.msra.mxu0 %v634_v22  ;;  %v3824_v22 = vpack.c.bf16 %v574_v12, %v572_v11  ;;  %v588_v11 = vld [vmem:[%s3668_s14 + $0x540] sm:$0xff]  ;;  %v3871_v12 = vpack.c.bf16 %v591_v62, %v589_v61  ;;  %v515_v61 = vld [vmem:[%s3668_s14 + $0x2f8] sm:$0xff]  ;;  %v3098_v62 = vld [vmem:[#allocation5 + $0x90] ss:$24 sps:$4 sm:$0xff]  }
  0xb3   : > { %1236 = vmatprep.subr.bf16.mxu0 %v637_v26  ;;  %v578_v26 = vld [vmem:[%s3668_s14 + $0x4f0] sm:$0xff] }
  0xb4   : > { %2843 = vmatpush1.bf16.msra.mxu1 %v3824_v22 }
  0xb5   : > { %2828 = vmatprep.subr.bf16.mxu1 %v3828_v24 }
  0xb6   : > { %1237 = vmatpush1.bf16.msra.mxu0 %v636_v36  ;;  %v490_v36 = vld [vmem:[%s3668_s14 + $0x230] sm:$0xff] }
  0xb7   : > { %1238 = vmatprep.subr.bf16.mxu0 %v639_v40  ;;  %v3839_v40 = vpack.c.bf16 %v578_v26, %v576_v25  ;;  %v646_v47 = vpack.c.bf16 %v490_v36, %v488_v31  ;;  %v507_v25 = vld [vmem:[%s3668_s14 + $0x2b8] sm:$0xff]  ;;  %v3881_v26 = vpack.c.bf16 %v590_v13, %v588_v11  ;;  %v512_v11 = vld [vmem:[%s3668_s14 + $0x2e0] sm:$0xff]  ;;  %v514_v13 = vld [vmem:[%s3668_s14 + $0x2f0] sm:$0xff] }
  0xb8   : > { %v3095_v31 = vld [vmem:[#allocation5 + $0x60] ss:$24 sps:$4 sm:$0xff]   ;;  %v655_v42 = vpack.c.bf16 %v507_v25, %v505_v23  ;;  %v3923_v23 = vpack.c.bf16 %v602_v7, %v600_v5  ;;  %v3132_v7 = vld [vmem:[#allocation5 + $0x70] ss:$24 sps:$4 sm:$0xff]  }
  0xb9   : > { %2844 = vmatpush1.bf16.msra.mxu1 %v3839_v40 }
  0xba   : > { %1239 = vmatpush1.bf16.msra.mxu0 %v638_v50  ;;  %v494_v50 = vld [vmem:[%s3668_s14 + $0x250] sm:$0xff]  ;;  %2829 = vmatprep.subr.bf16.mxu1 %v3842_v41 }
  0xbb   : > { %1240 = vmatprep.subr.bf16.mxu0 %v641_v54  ;;  %v499_v54 = vld [vmem:[%s3668_s14 + $0x278] sm:$0xff]  ;;  %v648_v0 = vpack.c.bf16 %v494_v50, %v492_v49  ;;  %v598_v49 = vld [vmem:[%s3668_s14 + $0x590] sm:$0xff]  ;;  %v508_v50 = vld [vmem:[%s3668_s14 + $0x2c0] sm:$0xff] }
  0xbc   : > { %v651_v3 = vpack.c.bf16 %v499_v54, %v497_v51  ;;  %v510_v51 = vld [vmem:[%s3668_s14 + $0x2d0] sm:$0xff]  ;;  %v601_v54 = vld [vmem:[%s3668_s14 + $0x5a8] sm:$0xff] }
  0xbd   : > { %2845 = vmatpush1.bf16.msra.mxu1 %v3852_v52 }
  0xbe   : > { %1241 = vmatpush1.bf16.msra.mxu0 %v640_v63  ;;  %v3093_v63 = vld [vmem:[#allocation5 + $0x64] ss:$24 sps:$4 sm:$0xff]   ;;  %2830 = vmatprep.subr.bf16.mxu1 %v3856_v55 }
  0xbf   : > { %1242 = vmatprep.subr.bf16.mxu0 %v643_v2  ;;  %v498_v2 = vld [vmem:[%s3668_s14 + $0x270] sm:$0xff] }
  0xc0   : > { %v650_v17 = vpack.c.bf16 %v498_v2, %v496_v1  ;;  %v3134_v1 = vld [vmem:[#allocation5 + $0x74] ss:$24 sps:$4 sm:$0xff]   ;;  %v3099_v2 = vld [vmem:[#allocation5 + $0xc4] ss:$24 sps:$4 sm:$0xff]  }
  0xc1   : > { %2846 = vmatpush1.bf16.msra.mxu1 %v3867_v8  ;;  %1570 = vmatprep.mubr.bf16.mxu1 %v3134_v1  ;;  %v524_v1 = vld [vmem:[%s3668_s14 + $0x340] sm:$0xff] }
  0xc2   : > { %1243 = vmatpush1.bf16.msra.mxu0 %v642_v14  ;;  %v593_v14 = vld [vmem:[%s3668_s14 + $0x568] sm:$0xff]  ;;  %2831 = vmatprep.subr.bf16.mxu1 %v3871_v12 }
  0xc3   : > { %1365 = vmatprep.subr.bf16.mxu0 %v645_v18  ;;  %v500_v18 = vld [vmem:[%s3668_s14 + $0x280] sm:$0xff] }
  0xc4   : > { %v652_v36 = vpack.c.bf16 %v502_v19, %v500_v18  ;;  %v517_v18 = vld [vmem:[%s3668_s14 + $0x308] sm:$0xff] }
  0xc5   : > { %1245 = vmatmul.mubr.bf16.vlgmr.msra.gmra.mrb[0].mxu0 %v3087_v27  ;;  %v592_v27 = vld [vmem:[%s3668_s14 + $0x560] sm:$0xff]  ;;  %2847 = vmatpush1.bf16.msra.mxu1 %v3881_v26 }
  0xc6   : > { %1254 = vmatprep.mubr.bf16.mxu0 %v3090_v28  ;;  %1366 = vmatpush1.bf16.msra.mxu0 %v644_v30  ;;  %v3885_v28 = vpack.c.bf16 %v595_v15, %v593_v14  ;;  %v594_v30 = vld [vmem:[%s3668_s14 + $0x570] sm:$0xff]  ;;  %v605_v14 = vld [vmem:[%s3668_s14 + $0x5c8] sm:$0xff]  ;;  %v607_v15 = vld [vmem:[%s3668_s14 + $0x5d8] sm:$0xff] }
  0xc7   : > { %1367 = vmatprep.subr.bf16.mxu0 %v647_v35  ;;  %v3096_v35 = vld [vmem:[#allocation5 + $0x94] ss:$24 sps:$4 sm:$0xff]   ;;  %v3895_v46 = vpack.c.bf16 %v594_v30, %v592_v27  ;;  %v3926_v25 = vpack.c.bf16 %v607_v15, %v605_v14  ;;  %v604_v27 = vld [vmem:[%s3668_s14 + $0x5c0] sm:$0xff] }
  0xc8   : > { %2832 = vmatprep.subr.bf16.mxu1 %v3885_v28  ;;  %v606_v30 = vld [vmem:[%s3668_s14 + $0x5d0] sm:$0xff]  ;;  %v3138_v14 = vld [vmem:[#allocation5 + $0xa4] ss:$24 sps:$4 sm:$0xff]  }
  0xc9   : > { %2848 = vmatpush1.bf16.msra.mxu1 %v3895_v46  ;;  %v3105_v15 = vld [vmem:[#allocation5 + $0x124] ss:$24 sps:$4 sm:$0xff]  }
  0xca   : > { %1368 = vmatpush1.bf16.msra.mxu0 %v646_v47  ;;  %v596_v47 = vld [vmem:[%s3668_s14 + $0x580] sm:$0xff] }
  0xcb   : > { %1369 = vmatprep.subr.bf16.mxu0 %v649_v48  ;;  %v3899_v48 = vpack.c.bf16 %v599_v34, %v597_v32  ;;  %v518_v32 = vld [vmem:[%s3668_s14 + $0x310] sm:$0xff]  ;;  %v609_v34 = vld [vmem:[%s3668_s14 + $0x5e8] sm:$0xff] }
  0xcd   : > { %1255 = vmatmul.mubr.bf16.gmra.mrb[4].mxu0 %v3092_v59  ;;  %v513_v59 = vld [vmem:[%s3668_s14 + $0x2e8] sm:$0xff]  ;;  %2833 = vmatprep.subr.bf16.mxu1 %v3899_v48 }
  0xce   : > { %1264 = vmatprep.mubr.bf16.mxu0 %v3093_v63  ;;  %1370 = vmatpush1.bf16.msra.mxu0 %v648_v0  ;;  %v657_v63 = vpack.c.bf16 %v511_v45, %v509_v44  ;;  %v3909_v0 = vpack.c.bf16 %v598_v49, %v596_v47  ;;  %v659_v19 = vpack.c.bf16 %v515_v61, %v513_v59  ;;  %v608_v47 = vld [vmem:[%s3668_s14 + $0x5e0] sm:$0xff]  ;;  %v610_v49 = vld [vmem:[%s3668_s14 + $0x5f0] sm:$0xff] }
  0xcf   : > { %1371 = vmatprep.subr.bf16.mxu0 %v651_v3  ;;  %v3912_v3 = vpack.c.bf16 %v603_v57, %v601_v54  ;;  %v3937_v44 = vpack.c.bf16 %v606_v30, %v604_v27  ;;  %v520_v57 = vld [vmem:[%s3668_s14 + $0x320] sm:$0xff]  ;;  %v522_v59 = vld [vmem:[%s3668_s14 + $0x330] sm:$0xff]  ;;  %v3947_v61 = vpack.c.bf16 %v610_v49, %v608_v47  ;;  %v537_v49 = vld [vmem:[%s3668_s14 + $0x3a8] sm:$0xff] }
  0xd0   : > { %2849 = vmatpush1.bf16.msra.mxu1 %v3909_v0  ;;  %v662_v5 = vpack.c.bf16 %v522_v59, %v520_v57  ;;  %v528_v27 = vld [vmem:[%s3668_s14 + $0x360] sm:$0xff]  ;;  %v530_v30 = vld [vmem:[%s3668_s14 + $0x370] sm:$0xff] }
  0xd1   : > { %2834 = vmatprep.subr.bf16.mxu1 %v3912_v3  ;;  %v666_v47 = vpack.c.bf16 %v530_v30, %v528_v27  ;;  %v3107_v57 = vld [vmem:[#allocation5 + $0x120] ss:$24 sps:$4 sm:$0xff]   ;;  %v3146_v27 = vld [vmem:[#allocation5 + $0xd0] ss:$24 sps:$4 sm:$0xff]   ;;  %v3150_v30 = vld [vmem:[#allocation5 + $0x104] ss:$24 sps:$4 sm:$0xff]  }
  0xd2   : > { %1372 = vmatpush1.bf16.msra.mxu0 %v650_v17  ;;  %v656_v17 = vpack.c.bf16 %v510_v51, %v508_v50  ;;  %v3101_v50 = vld [vmem:[#allocation5 + $0xc0] ss:$24 sps:$4 sm:$0xff]   ;;  %v3102_v51 = vld [vmem:[#allocation5 + $0xf4] ss:$24 sps:$4 sm:$0xff]  }
  0xd3   : > { %1373 = vmatprep.subr.bf16.mxu0 %v653_v20  ;;  %v519_v20 = vld [vmem:[%s3668_s14 + $0x318] sm:$0xff]  ;;  %v712_v59 = vld [vmem:[%s4655_s2 + $0x20] sm:$0xff] }
  0xd4   : > { %v661_v39 = vpack.c.bf16 %v519_v20, %v517_v18  ;;  %2850 = vmatpush1.bf16.msra.mxu1 %v3923_v23  ;;  %v531_v18 = vld [vmem:[%s3668_s14 + $0x378] sm:$0xff]  ;;  %v708_v20 = vld [vmem:[%s4655_s2] sm:$0xff] }
  0xd5   : > { %1265 = vmatmul.mubr.bf16.gmra.mrb[8].mxu0 %v3095_v31  ;;  %v516_v31 = vld [vmem:[%s3668_s14 + $0x300] sm:$0xff]  ;;  %2835 = vmatprep.subr.bf16.mxu1 %v3926_v25 }
  0xd6   : > { %1274 = vmatprep.mubr.bf16.mxu0 %v3096_v35  ;;  %1374 = vmatpush1.bf16.msra.mxu0 %v652_v36  ;;  %v611_v35 = vld [vmem:[%s3668_s14 + $0x5f8] sm:$0xff]  ;;  %v658_v36 = vpack.c.bf16 %v514_v13, %v512_v11  ;;  %v660_v54 = vpack.c.bf16 %v518_v32, %v516_v31  ;;  %v3104_v11 = vld [vmem:[#allocation5 + $0xf0] ss:$24 sps:$4 sm:$0xff]  }
  0xd7   : > { %1375 = vmatprep.subr.bf16.mxu0 %v655_v42  ;;  %v523_v42 = vld [vmem:[%s3668_s14 + $0x338] sm:$0xff]  ;;  %v3940_v45 = vpack.c.bf16 %v611_v35, %v609_v34  ;;  %v533_v32 = vld [vmem:[%s3668_s14 + $0x388] sm:$0xff] }
  0xd8   : > { %2851 = vmatpush1.bf16.msra.mxu1 %v3937_v44  ;;  %v535_v35 = vld [vmem:[%s3668_s14 + $0x398] sm:$0xff] }
  0xd9   : > { %2836 = vmatprep.subr.bf16.mxu1 %v3940_v45 }
  0xda   : > { %1376 = vmatpush1.bf16.msra.mxu0 %v654_v58  ;;  %v663_v58 = vpack.c.bf16 %v523_v42, %v521_v38  ;;  %v534_v38 = vld [vmem:[%s3668_s14 + $0x390] sm:$0xff] }
  0xdb   : > { %1377 = vmatprep.subr.bf16.mxu0 %v657_v63  ;;  %v527_v63 = vld [vmem:[%s3668_s14 + $0x358] sm:$0xff]  ;;  %v710_v42 = vld [vmem:[%s4655_s2 + $0x10] sm:$0xff] }
  0xdc   : > { %2852 = vmatpush1.bf16.msra.mxu1 %v3947_v61 }
  0xdd   : > { %1275 = vmatmul.mubr.bf16.gmra.mrb[12].mxu0 %v3098_v62  ;;  %v525_v62 = vld [vmem:[%s3668_s14 + $0x348] sm:$0xff] }
  0xde   : > { %1284 = vmatprep.mubr.bf16.mxu0 %v3099_v2  ;;  %1378 = vmatpush1.bf16.msra.mxu0 %v656_v17  ;;  %v526_v2 = vld [vmem:[%s3668_s14 + $0x350] sm:$0xff]  ;;  %v665_v13 = vpack.c.bf16 %v527_v63, %v525_v62  ;;  %v529_v17 = vld [vmem:[%s3668_s14 + $0x368] sm:$0xff]  ;;  %v536_v63 = vld [vmem:[%s3668_s14 + $0x3a0] sm:$0xff] }
  0xdf   : > { %1379 = vmatprep.subr.bf16.mxu0 %v659_v19  ;;  %v3430_v19 = vmov 0   ;;  %v664_v31 = vpack.c.bf16 %v526_v2, %v524_v1  ;;  %1571 = vmatmul.mubr.bf16.vlgmr.msra.gmra.mrb[0].mxu1 %v3132_v7  ;;  %v667_v34 = vpack.c.bf16 %v531_v18, %v529_v17  ;;  %v3108_v62 = vld [vmem:[#allocation5 + $0x154] ss:$24 sps:$4 sm:$0xff]  }
  0xe0   : > { %3085 = vset.pattern.permute.xlu0 %v3430_v19  ;;  %3086 = vset.pattern.permute.xlu1 %v3430_v19  ;;  %v538_v1 = vld [vmem:[%s3668_s14 + $0x3b0] sm:$0xff]  ;;  %v545_v19 = vld [vmem:[%s3668_s14 + $0x3e8] sm:$0xff] }
  0xe1   : > { %734 = vperm.xlu0 %3085, %v708_v20   ;;  %1580 = vmatprep.mubr.bf16.mxu1 %v3138_v14  ;;  %v542_v14 = vld [vmem:[%s3668_s14 + $0x3d0] sm:$0xff]  ;;  %v670_v18 = vpack.c.bf16 %v538_v1, %v536_v63  ;;  %v547_v20 = vld [vmem:[%s3668_s14 + $0x3f8] sm:$0xff] }
  0xe2   : > { %1380 = vmatpush1.bf16.msra.mxu0 %v658_v36  ;;  %v532_v36 = vld [vmem:[%s3668_s14 + $0x380] sm:$0xff]  ;;  %744 = vperm.xlu1 %3086, %v710_v42   ;;  %v714_v17 = vld [vmem:[%s4655_s2 + $0x30] sm:$0xff]  ;;  %v719_v1 = vld [vmem:[%s4655_s2 + $0x58] sm:$0xff] }
  0xe3   : > { %1381 = vmatprep.subr.bf16.mxu0 %v661_v39  ;;  %v709_v39 = vld [vmem:[%s4655_s2 + $0x8] sm:$0xff]  ;;  %v668_v2 = vpack.c.bf16 %v534_v38, %v532_v36  ;;  %v3111_v36 = vld [vmem:[#allocation5 + $0x184] ss:$24 sps:$4 sm:$0xff]  }
  0xe4   : > { %v544_v38 = vld [vmem:[%s3668_s14 + $0x3e0] sm:$0xff]  ;;  %v3114_v63 = vld [vmem:[#allocation5 + $0x1b4] ss:$24 sps:$4 sm:$0xff]  }
  0xe5   : > { %1285 = vmatmul.mubr.bf16.gmra.mrb[16].mxu0 %v3101_v50  ;;  %v539_v50 = vld [vmem:[%s3668_s14 + $0x3b8] sm:$0xff]  ;;  %739 = vperm.xlu0 %3085, %v709_v39   ;;  %v546_v39 = vld [vmem:[%s3668_s14 + $0x3f0] sm:$0xff] }
  0xe6   : > { %1294 = vmatprep.mubr.bf16.mxu0 %v3102_v51  ;;  %1382 = vmatpush1.bf16.msra.mxu0 %v660_v54  ;;  %v3140_v51 = vld [vmem:[#allocation5 + $0xa0] ss:$24 sps:$4 sm:$0xff]   ;;  %v3144_v54 = vld [vmem:[#allocation5 + $0xd4] ss:$24 sps:$4 sm:$0xff]   ;;  %v671_v7 = vpack.c.bf16 %v539_v50, %v537_v49 }
  0xe7   : > { %1383 = vmatprep.subr.bf16.mxu0 %v663_v58  ;;  %v669_v58 = vpack.c.bf16 %v535_v35, %v533_v32  ;;  %1581 = vmatmul.mubr.bf16.gmra.mrb[4].mxu1 %v3140_v51  ;;  %v716_v35 = vld [vmem:[%s4655_s2 + $0x40] sm:$0xff]  ;;  %v715_v49 = vld [vmem:[%s4655_s2 + $0x38] sm:$0xff]  ;;  %v718_v50 = vld [vmem:[%s4655_s2 + $0x50] sm:$0xff]  ;;  %v674_v51 = vpack.c.bf16 %v546_v39, %v544_v38 }
  0xe8   : > { %1590 = vmatprep.mubr.bf16.mxu1 %v3144_v54  ;;  %v3152_v54 = vld [vmem:[#allocation5 + $0x100] ss:$24 sps:$4 sm:$0xff]   ;;  %v3122_v38 = vld [vmem:[#allocation5 + $0x210] ss:$24 sps:$4 sm:$0xff]  }
  0xe9   : > { %754 = vperm.xlu0 %3085, %v712_v59   ;;  %v717_v59 = vld [vmem:[%s4655_s2 + $0x48] sm:$0xff] }
  0xea   : > { %1384 = vmatpush1.bf16.msra.mxu0 %v662_v5  ;;  %v541_v5 = vld [vmem:[%s3668_s14 + $0x3c8] sm:$0xff] }
  0xeb   : > { %1385 = vmatprep.subr.bf16.mxu0 %v665_v13  ;;  %v540_v13 = vld [vmem:[%s3668_s14 + $0x3c0] sm:$0xff]  ;;  %v729_v39 = vld [vmem:[%s4655_s2 + $0xa8] sm:$0xff] }
  0xec   : > { %v672_v42 = vpack.c.bf16 %v542_v14, %v540_v13  ;;  %v724_v13 = vld [vmem:[%s4655_s2 + $0x80] sm:$0xff] }
  0xed   : > { %1295 = vmatmul.mubr.bf16.gmra.mrb[20].mxu0 %v3104_v11  ;;  %v543_v11 = vld [vmem:[%s3668_s14 + $0x3d8] sm:$0xff]  ;;  %764 = vperm.xlu0 %3085, %v714_v17   ;;  %v726_v17 = vld [vmem:[%s4655_s2 + $0x90] sm:$0xff]  ;;  %s4599_s14 = scalar_lea.hbm %s4659_s6, %s2820_s0 }
  0xee   : > { %1304 = vmatprep.mubr.bf16.mxu0 %v3105_v15  ;;  %1386 = vmatpush1.bf16.msra.mxu0 %v664_v31  ;;  %v711_v15 = vld [vmem:[%s4655_s2 + $0x18] sm:$0xff]  ;;  %v3110_v31 = vld [vmem:[#allocation5 + $0x150] ss:$24 sps:$4 sm:$0xff]   ;;  %v673_v32 = vpack.c.bf16 %v543_v11, %v541_v5 }
  0xef   : > { %1387 = vmatprep.subr.bf16.mxu0 %v667_v34  ;;  %749 = vperm.xlu1 %3086, %v711_v15   ;;  %v713_v34 = vld [vmem:[%s4655_s2 + $0x28] sm:$0xff]  ;;  %v3117_v14 = vld [vmem:[#allocation5 + $0x1e4] ss:$24 sps:$4 sm:$0xff]  }
  0xf0   : > { %1591 = vmatmul.mubr.bf16.gmra.mrb[8].mxu1 %v3146_v27  ;;  %v3158_v5 = vld [vmem:[#allocation5 + $0x130] ss:$24 sps:$4 sm:$0xff]   ;;  %v723_v15 = vld [vmem:[%s4655_s2 + $0x78] sm:$0xff] }
  0xf1   : > { %1600 = vmatprep.mubr.bf16.mxu1 %v3150_v30  ;;  %774 = vperm.xlu0 %3085, %v716_v35   ;;  %v3116_v11 = vld [vmem:[#allocation5 + $0x1b0] ss:$24 sps:$4 sm:$0xff]   ;;  %v728_v30 = vld [vmem:[%s4655_s2 + $0xa0] sm:$0xff] }
  0xf2   : > { %1388 = vmatpush1.bf16.msra.mxu0 %v666_v47  ;;  %v675_v47 = vpack.c.bf16 %v547_v20, %v545_v19  ;;  %v3168_v19 = vld [vmem:[#allocation5 + $0x194] ss:$24 sps:$4 sm:$0xff]   ;;  %v3119_v20 = vld [vmem:[#allocation5 + $0x1e0] ss:$24 sps:$4 sm:$0xff]   ;;  %v3170_v35 = vld [vmem:[#allocation5 + $0x190] ss:$24 sps:$4 sm:$0xff]  }
  0xf3   : > { %1389 = vmatprep.subr.bf16.mxu0 %v669_v58  ;;  %759 = vperm.xlu1 %3086, %v713_v34   ;;  %v3113_v58 = vld [vmem:[#allocation5 + $0x180] ss:$24 sps:$4 sm:$0xff]   ;;  %v725_v27 = vld [vmem:[%s4655_s2 + $0x88] sm:$0xff]  ;;  %v730_v34 = vld [vmem:[%s4655_s2 + $0xb0] sm:$0xff] }
  0xf5   : > { %1305 = vmatmul.mubr.bf16.gmra.mrb[24].mxu0 %v3107_v57  ;;  %v3156_v57 = vld [vmem:[#allocation5 + $0x134] ss:$24 sps:$4 sm:$0xff]   ;;  %784 = vperm.xlu0 %3085, %v718_v50  }
  0xf6   : > { %1314 = vmatprep.mubr.bf16.mxu0 %v3108_v62  ;;  %1390 = vmatpush1.bf16.msra.mxu0 %v668_v2  ;;  %v720_v62 = vld [vmem:[%s4655_s2 + $0x60] sm:$0xff]  ;;  %v722_v2 = vld [vmem:[%s4655_s2 + $0x70] sm:$0xff] }
  0xf7   : > { %1391 = vmatprep.subr.bf16.mxu0 %v671_v7  ;;  %769 = vperm.xlu1 %3086, %v715_v49   ;;  %v3162_v7 = vld [vmem:[#allocation5 + $0x164] ss:$24 sps:$4 sm:$0xff]   ;;  %v1777_v50 = vld [vmem:[%s4657_s4 + $0x10] sm:$0xff] }
  0xf8   : > { %1601 = vmatmul.mubr.bf16.gmra.mrb[12].mxu1 %v3152_v54  ;;  %v731_v49 = vld [vmem:[%s4655_s2 + $0xb8] sm:$0xff]  ;;  %v3180_v54 = vld [vmem:[#allocation5 + $0x1f4] ss:$24 sps:$4 sm:$0xff]  }
  0xf9   : > { %1610 = vmatprep.mubr.bf16.mxu1 %v3156_v57  ;;  %794 = vperm.xlu0 %3085, %v720_v62   ;;  %v3123_v57 = vld [vmem:[#allocation5 + $0x8] ss:$24 sps:$4 sm:$0xff]   ;;  %v3126_v62 = vld [vmem:[#allocation5 + $0x3c] ss:$24 sps:$4 sm:$0xff]  }
  0xfa   : > { %1392 = vmatpush1.bf16.msra.mxu0 %v670_v18  ;;  %v3164_v18 = vld [vmem:[#allocation5 + $0x160] ss:$24 sps:$4 sm:$0xff]  }
  0xfb   : > { %1393 = vmatprep.subr.bf16.mxu0 %v673_v32  ;;  %779 = vperm.xlu1 %3086, %v717_v59   ;;  %v727_v32 = vld [vmem:[%s4655_s2 + $0x98] sm:$0xff]  ;;  %v1779_v59 = vld [vmem:[%s4657_s4 + $0x20] sm:$0xff] }
  0xfd   : > { %1315 = vmatmul.mubr.bf16.gmra.mrb[28].mxu0 %v3110_v31  ;;  %804 = vperm.xlu0 %3085, %v722_v2   ;;  %v3120_v31 = vld [vmem:[#allocation5 + $0x214] ss:$24 sps:$4 sm:$0xff]   ;;  %v3182_v2 = vld [vmem:[#allocation5 + $0x1f0] ss:$24 sps:$4 sm:$0xff]  }
  0xfe   : > { %1324 = vmatprep.mubr.bf16.mxu0 %v3111_v36  ;;  %1394 = vmatpush1.bf16.msra.mxu0 %v672_v42  ;;  %v3174_v36 = vld [vmem:[#allocation5 + $0x1c4] ss:$24 sps:$4 sm:$0xff]  }
  0xff   : > { %1395 = vmatprep.subr.bf16.mxu0 %v675_v47  ;;  %789 = vperm.xlu1 %3086, %v719_v1   ;;  %v1775_v42 = vld [vmem:[%s4657_s4] sm:$0xff]  ;;  %v1781_v1 = vld [vmem:[%s4657_s4 + $0x30] sm:$0xff] }
 0x100   : > { %1611 = vmatmul.mubr.bf16.gmra.mrb[16].mxu1 %v3158_v5  ;;  %v3125_v47 = vld [vmem:[#allocation5 + $0xc] ss:$24 sps:$4 sm:$0xff]  }
 0x101   : > { %1620 = vmatprep.mubr.bf16.mxu1 %v3162_v7  ;;  %814 = vperm.xlu0 %3085, %v724_v13   ;;  %v3186_v5 = vld [vmem:[#allocation5 + $0x224] ss:$24 sps:$4 sm:$0xff]   ;;  %v3128_v7 = vld [vmem:[#allocation5 + $0x38] ss:$24 sps:$4 sm:$0xff]  }
 0x102   : > { %1396 = vmatpush1.bf16.msra.mxu0 %v674_v51  ;;  %v3176_v51 = vld [vmem:[#allocation5 + $0x1c0] ss:$24 sps:$4 sm:$0xff]   ;;  %v3129_v13 = vld [vmem:[#allocation5 + $0x6c] ss:$24 sps:$4 sm:$0xff]  }
 0x103   : > { %1518 = vmatprep.subr.bf16.mxu0 %v3735_v6  ;;  %v721_v6 = vld [vmem:[%s4655_s2 + $0x68] sm:$0xff] }
 0x104   : > { %799 = vperm.xlu1 %3086, %v721_v6   ;;  %v1783_v6 = vld [vmem:[%s4657_s4 + $0x40] sm:$0xff] }
 0x105   : > { %1325 = vmatmul.mubr.bf16.gmra.mrb[32].mxu0 %v3113_v58  ;;  %824 = vperm.xlu0 %3085, %v726_v17   ;;  %v1776_v58 = vld [vmem:[%s4657_s4 + $0x8] sm:$0xff]  ;;  %v3135_v17 = vld [vmem:[#allocation5 + $0x9c] ss:$24 sps:$4 sm:$0xff]  }
 0x106   : > { %1334 = vmatprep.mubr.bf16.mxu0 %v3114_v63  ;;  %v1778_v63 = vld [vmem:[%s4657_s4 + $0x18] sm:$0xff] }
 0x108   : > { %809 = vperm.xlu1 %3086, %v723_v15   ;;  %1621 = vmatmul.mubr.bf16.gmra.mrb[20].mxu1 %v3164_v18  ;;  %v1787_v15 = vld [vmem:[%s4657_s4 + $0x60] sm:$0xff] }
 0x109   : > { %1630 = vmatprep.mubr.bf16.mxu1 %v3168_v19  ;;  %834 = vperm.xlu0 %3085, %v728_v30   ;;  %v1791_v18 = vld [vmem:[%s4657_s4 + $0x80] sm:$0xff] }
 0x10a   : > { %v3141_v19 = vld [vmem:[#allocation5 + $0xcc] ss:$24 sps:$4 sm:$0xff]  }
 0x10b   : > { %v1799_v30 = vld [vmem:[%s4657_s4 + $0xc0] sm:$0xff] }
 0x10c   : > { %819 = vperm.xlu1 %3086, %v725_v27   ;;  %v3147_v27 = vld [vmem:[#allocation5 + $0xfc] ss:$24 sps:$4 sm:$0xff]  }
 0x10d   : > { %1335 = vmatmul.mubr.bf16.gmra.mrb[36].mxu0 %v3116_v11  ;;  %844 = vperm.xlu0 %3085, %v730_v34   ;;  %v1780_v11 = vld [vmem:[%s4657_s4 + $0x28] sm:$0xff]  ;;  %v3159_v34 = vld [vmem:[#allocation5 + $0x15c] ss:$24 sps:$4 sm:$0xff]  }
 0x10e   : > { %1344 = vmatprep.mubr.bf16.mxu0 %v3117_v14  ;;  %v3188_v14 = vld [vmem:[#allocation5 + $0x220] ss:$24 sps:$4 sm:$0xff]  }
 0x110   : > { %829 = vperm.xlu1 %3086, %v727_v32   ;;  %1631 = vmatmul.mubr.bf16.gmra.mrb[24].mxu1 %v3170_v35  ;;  %v1803_v32 = vld [vmem:[%s4657_s4 + $0xe0] sm:$0xff] }
 0x111   : > { %1640 = vmatprep.mubr.bf16.mxu1 %v3174_v36  ;;  %1809 = vperm.xlu0 %3085, %v1775_v42   ;;  %v3165_v35 = vld [vmem:[#allocation5 + $0x18c] ss:$24 sps:$4 sm:$0xff]   ;;  %v3171_v36 = vld [vmem:[#allocation5 + $0x1bc] ss:$24 sps:$4 sm:$0xff]   ;;  %v3185_v42 = vld [vmem:[#allocation5 + $0x218] ss:$24 sps:$4 sm:$0xff]  }
 0x114   : > { %839 = vperm.xlu1 %3086, %v729_v39   ;;  %v3183_v39 = vld [vmem:[#allocation5 + $0x21c] ss:$24 sps:$4 sm:$0xff]  }
 0x115   : > { %1345 = vmatmul.mubr.bf16.gmra.mrb[40].mxu0 %v3119_v20  ;;  %1819 = vperm.xlu0 %3085, %v1777_v50   ;;  %v1795_v20 = vld [vmem:[%s4657_s4 + $0xa0] sm:$0xff] }
 0x116   : > { %1354 = vmatprep.mubr.bf16.mxu0 %v3120_v31  ;;  %v3153_v31 = vld [vmem:[#allocation5 + $0x12c] ss:$24 sps:$4 sm:$0xff]  }
 0x118   : > { %849 = vperm.xlu1 %3086, %v731_v49   ;;  %1641 = vmatmul.mubr.bf16.gmra.mrb[28].mxu1 %v3176_v51  ;;  %v3194_v49 = vld [vmem:[#allocation5 + $0x40] ss:$24 sps:$4 sm:$0xff]  }
 0x119   : > { %1650 = vmatprep.mubr.bf16.mxu1 %v3180_v54  ;;  %1829 = vperm.xlu0 %3085, %v1779_v59  }
 0x11c   : > { %1814 = vperm.xlu1 %3086, %v1776_v58  }
 0x11d   : > { %1355 = vmatmul.mubr.bf16.gmra.mrb[44].mxu0 %v3122_v38  ;;  %1839 = vperm.xlu0 %3085, %v1781_v1   ;;  %v3179_v38 = vld [vmem:[#allocation5 + $0x1e8] ss:$24 sps:$4 sm:$0xff]  }
 0x11e   : > { %1397 = vmatprep.mubr.bf16.mxu0 %v3125_v47  ;;  %v3191_v47 = vld [vmem:[#allocation5 + $0x14] ss:$24 sps:$4 sm:$0xff]  }
 0x120   : > { %1824 = vperm.xlu1 %3086, %v1778_v63   ;;  %1651 = vmatmul.mubr.bf16.gmra.mrb[32].mxu1 %v3182_v2 }
 0x121   : > { %1660 = vmatprep.mubr.bf16.mxu1 %v3186_v5  ;;  %1849 = vperm.xlu0 %3085, %v1783_v6  }
 0x124   : > { %1834 = vperm.xlu1 %3086, %v1780_v11  }
 0x125   : > { %1398 = vmatmul.mubr.bf16.vlgmr.msra.gmra.mrb[0].mxu0 %v3123_v57 }
 0x126   : > { %1407 = vmatprep.mubr.bf16.mxu0 %v3126_v62  ;;  %1519 = vmatpush1.bf16.msra.mxu0 %v3740_v10  ;;  %v1782_v10 = vld [vmem:[%s4657_s4 + $0x38] sm:$0xff] }
 0x127   : > { %1520 = vmatprep.subr.bf16.mxu0 %v3747_v16  ;;  %v1785_v16 = vld [vmem:[%s4657_s4 + $0x50] sm:$0xff] }
 0x128   : > { %1844 = vperm.xlu1 %3086, %v1782_v10   ;;  %1859 = vperm.xlu0 %3085, %v1785_v16  }
 0x129   : > { %1661 = vmatmul.mubr.bf16.gmra.mrb[36].mxu1 %v3188_v14 }
 0x12a   : > { %1521 = vmatpush1.bf16.msra.mxu0 %v3754_v21  ;;  %v3131_v21 = vld [vmem:[#allocation5 + $0x68] ss:$24 sps:$4 sm:$0xff]  }
 0x12b   : > { %1522 = vmatprep.subr.bf16.mxu0 %v3762_v29  ;;  %v1784_v29 = vld [vmem:[%s4657_s4 + $0x48] sm:$0xff] }
 0x12c   : > { %1854 = vperm.xlu1 %3086, %v1784_v29   ;;  %1869 = vperm.xlu0 %3085, %v1787_v15  }
 0x12d   : > { %1408 = vmatmul.mubr.bf16.gmra.mrb[4].mxu0 %v3128_v7 }
 0x12e   : > { %1417 = vmatprep.mubr.bf16.mxu0 %v3129_v13  ;;  %1523 = vmatpush1.bf16.msra.mxu0 %v3767_v33  ;;  %v1786_v33 = vld [vmem:[%s4657_s4 + $0x58] sm:$0xff] }
 0x12f   : > { %1524 = vmatprep.subr.bf16.mxu0 %v3772_v37  ;;  %v1789_v37 = vld [vmem:[%s4657_s4 + $0x70] sm:$0xff] }
 0x130   : > { %1864 = vperm.xlu1 %3086, %v1786_v33   ;;  %1879 = vperm.xlu0 %3085, %v1789_v37  }
 0x132   : > { %1525 = vmatpush1.bf16.msra.mxu0 %v3779_v43  ;;  %v3137_v43 = vld [vmem:[#allocation5 + $0x98] ss:$24 sps:$4 sm:$0xff]  }
 0x133   : > { %1526 = vmatprep.subr.bf16.mxu0 %v3790_v53  ;;  %v1788_v53 = vld [vmem:[%s4657_s4 + $0x68] sm:$0xff] }
 0x134   : > { %1874 = vperm.xlu1 %3086, %v1788_v53   ;;  %1889 = vperm.xlu0 %3085, %v1791_v18  }
 0x135   : > { %1418 = vmatmul.mubr.bf16.gmra.mrb[8].mxu0 %v3131_v21 }
 0x136   : > { %1427 = vmatprep.mubr.bf16.mxu0 %v3135_v17  ;;  %1527 = vmatpush1.bf16.msra.mxu0 %v3794_v56  ;;  %v1790_v56 = vld [vmem:[%s4657_s4 + $0x78] sm:$0xff] }
 0x137   : > { %1528 = vmatprep.subr.bf16.mxu0 %v3800_v60  ;;  %v1793_v60 = vld [vmem:[%s4657_s4 + $0x90] sm:$0xff] }
 0x138   : > { %1884 = vperm.xlu1 %3086, %v1790_v56   ;;  %1899 = vperm.xlu0 %3085, %v1793_v60  }
 0x13a   : > { %1529 = vmatpush1.bf16.msra.mxu0 %v3808_v4  ;;  %v3143_v4 = vld [vmem:[#allocation5 + $0xc8] ss:$24 sps:$4 sm:$0xff]  }
 0x13b   : > { %1530 = vmatprep.subr.bf16.mxu0 %v3814_v9  ;;  %v1792_v9 = vld [vmem:[%s4657_s4 + $0x88] sm:$0xff] }
 0x13c   : > { %1894 = vperm.xlu1 %3086, %v1792_v9   ;;  %1909 = vperm.xlu0 %3085, %v1795_v20  }
 0x13d   : > { %1428 = vmatmul.mubr.bf16.gmra.mrb[12].mxu0 %v3137_v43 }
 0x13e   : > { %1437 = vmatprep.mubr.bf16.mxu0 %v3141_v19  ;;  %1531 = vmatpush1.bf16.msra.mxu0 %v3824_v22  ;;  %v1794_v22 = vld [vmem:[%s4657_s4 + $0x98] sm:$0xff] }
 0x13f   : > { %1532 = vmatprep.subr.bf16.mxu0 %v3828_v24  ;;  %v1797_v24 = vld [vmem:[%s4657_s4 + $0xb0] sm:$0xff] }
 0x140   : > { %1904 = vperm.xlu1 %3086, %v1794_v22   ;;  %1919 = vperm.xlu0 %3085, %v1797_v24  }
 0x142   : > { %1533 = vmatpush1.bf16.msra.mxu0 %v3839_v40  ;;  %v3149_v40 = vld [vmem:[#allocation5 + $0xf8] ss:$24 sps:$4 sm:$0xff]  }
 0x143   : > { %1534 = vmatprep.subr.bf16.mxu0 %v3842_v41  ;;  %v1796_v41 = vld [vmem:[%s4657_s4 + $0xa8] sm:$0xff] }
 0x144   : > { %1914 = vperm.xlu1 %3086, %v1796_v41   ;;  %1929 = vperm.xlu0 %3085, %v1799_v30  }
 0x145   : > { %1438 = vmatmul.mubr.bf16.gmra.mrb[16].mxu0 %v3143_v4 }
 0x146   : > { %1447 = vmatprep.mubr.bf16.mxu0 %v3147_v27  ;;  %1535 = vmatpush1.bf16.msra.mxu0 %v3852_v52  ;;  %v1798_v52 = vld [vmem:[%s4657_s4 + $0xb8] sm:$0xff] }
 0x147   : > { %1536 = vmatprep.subr.bf16.mxu0 %v3856_v55  ;;  %v1801_v55 = vld [vmem:[%s4657_s4 + $0xd0] sm:$0xff] }
 0x148   : > { %1924 = vperm.xlu1 %3086, %v1798_v52   ;;  %1939 = vperm.xlu0 %3085, %v1801_v55  }
 0x14a   : > { %1537 = vmatpush1.bf16.msra.mxu0 %v3867_v8  ;;  %v3155_v8 = vld [vmem:[#allocation5 + $0x128] ss:$24 sps:$4 sm:$0xff]  }
 0x14b   : > { %1538 = vmatprep.subr.bf16.mxu0 %v3871_v12  ;;  %v1800_v12 = vld [vmem:[%s4657_s4 + $0xc8] sm:$0xff] }
 0x14c   : > { %1934 = vperm.xlu1 %3086, %v1800_v12   ;;  %1949 = vperm.xlu0 %3085, %v1803_v32  }
 0x14d   : > { %1448 = vmatmul.mubr.bf16.gmra.mrb[20].mxu0 %v3149_v40 }
 0x14e   : > { %1457 = vmatprep.mubr.bf16.mxu0 %v3153_v31  ;;  %1539 = vmatpush1.bf16.msra.mxu0 %v3881_v26  ;;  %v1802_v26 = vld [vmem:[%s4657_s4 + $0xd8] sm:$0xff] }
 0x14f   : > { %1540 = vmatprep.subr.bf16.mxu0 %v3885_v28  ;;  %v1805_v28 = vld [vmem:[%s4657_s4 + $0xf0] sm:$0xff] }
 0x150   : > { %1944 = vperm.xlu1 %3086, %v1802_v26   ;;  %1959 = vperm.xlu0 %3085, %v1805_v28  }
 0x152   : > { %1541 = vmatpush1.bf16.msra.mxu0 %v3895_v46  ;;  %v3161_v46 = vld [vmem:[#allocation5 + $0x158] ss:$24 sps:$4 sm:$0xff]  }
 0x153   : > { %1542 = vmatprep.subr.bf16.mxu0 %v3899_v48  ;;  %v1804_v48 = vld [vmem:[%s4657_s4 + $0xe8] sm:$0xff] }
 0x154   : > { %1954 = vperm.xlu1 %3086, %v1804_v48  }
 0x155   : > { %1458 = vmatmul.mubr.bf16.gmra.mrb[24].mxu0 %v3155_v8 }
 0x156   : > { %1467 = vmatprep.mubr.bf16.mxu0 %v3159_v34  ;;  %1543 = vmatpush1.bf16.msra.mxu0 %v3909_v0  ;;  %v1806_v0 = vld [vmem:[%s4657_s4 + $0xf8] sm:$0xff] }
 0x157   : > { %1544 = vmatprep.subr.bf16.mxu0 %v3912_v3  ;;  %v3167_v3 = vld [vmem:[#allocation5 + $0x188] ss:$24 sps:$4 sm:$0xff]  }
 0x158   : > { %1964 = vperm.xlu1 %3086, %v1806_v0  }
 0x15a   : > { %1545 = vmatpush1.bf16.msra.mxu0 %v3923_v23  ;;  %v3173_v23 = vld [vmem:[#allocation5 + $0x1b8] ss:$24 sps:$4 sm:$0xff]  }
 0x15b   : > { %1546 = vmatprep.subr.bf16.mxu0 %v3926_v25  ;;  %v3177_v25 = vld [vmem:[#allocation5 + $0x1ec] ss:$24 sps:$4 sm:$0xff]  }
 0x15d   : > { %1468 = vmatmul.mubr.bf16.gmra.mrb[28].mxu0 %v3161_v46 }
 0x15e   : > { %1477 = vmatprep.mubr.bf16.mxu0 %v3165_v35  ;;  %1547 = vmatpush1.bf16.msra.mxu0 %v3937_v44  ;;  %v3189_v44 = vld [vmem:[#allocation5 + $0x10] ss:$24 sps:$4 sm:$0xff]  }
 0x15f   : > { %1548 = vmatprep.subr.bf16.mxu0 %v3940_v45  ;;  %v3192_v45 = vld [vmem:[#allocation5 + $0x44] ss:$24 sps:$4 sm:$0xff]  }
 0x160   : > { %v4231_v9 = vpop.permute.xlu0 %734 }
 0x161   : > { %v4235_v27 = vpop.permute.xlu1 %744 }
 0x162   : > { %1549 = vmatpush1.bf16.msra.mxu0 %v3947_v61  ;;  %4696 = vst [vmem:[#allocation17_spill] sm:$0xff] %v4235_v27 }
 0x164   : > { %v4243_v41 = vpop.permute.xlu0 %739 }
 0x165   : > { %1478 = vmatmul.mubr.bf16.gmra.mrb[32].mxu0 %v3167_v3  ;;  %4697 = vst [vmem:[#allocation18_spill] sm:$0xff] %v4243_v41 }
 0x166   : > { %1487 = vmatprep.mubr.bf16.mxu0 %v3171_v36 }
 0x168   : > { %v755_v55 = vpop.permute.xlu0 %754 }
 0x16d   : > { %1488 = vmatmul.mubr.bf16.gmra.mrb[36].mxu0 %v3173_v23 }
 0x16e   : > { %1497 = vmatprep.mubr.bf16.mxu0 %v3177_v25  ;;  %v4245_v30 = vpop.permute.xlu1 %749 }
 0x16f   : > { %4698 = vst [vmem:[#allocation19_spill] sm:$0xff] %v4245_v30 }
 0x172   : > { %v760_v28 = vpop.permute.xlu1 %759 }
 0x175   : > { %1498 = vmatmul.mubr.bf16.gmra.mrb[40].mxu0 %v3179_v38 }
 0x176   : > { %1507 = vmatprep.mubr.bf16.mxu0 %v3183_v39  ;;  %v770_v41 = vpop.permute.xlu1 %769 }
 0x17d   : > { %1508 = vmatmul.mubr.bf16.gmra.mrb[44].mxu0 %v3185_v42 }
 0x17e   : > { %1550 = vmatprep.mubr.bf16.mxu0 %v3191_v47  ;;  %v765_v47 = vpop.permute.xlu0 %764 }
 0x185   : > { %1551 = vmatmul.mubr.bf16.vlgmr.msra.gmra.mrb[0].mxu0 %v3189_v44 }
 0x186   : > { %1560 = vmatprep.mubr.bf16.mxu0 %v3192_v45 }
 0x18d   : > { %1561 = vmatmul.mubr.bf16.gmra.mrb[4].mxu0 %v3194_v49 }
 0x1b2   : > { %v1572_v61 = vpop.f32.mrb[0].mxu1 }
 0x1b3   : > { %v1574_v50 = vpop.f32.mrb[1].mxu1 }
 0x1b4   : > { %v1576_v51 = vpop.f32.mrb[2].mxu1 }
 0x1b5   : > { %v1578_v54 = vpop.f32.mrb[3].mxu1 }
 0x1ba   : > { %v4175_v57 = vpop.f32.mrb[4].mxu1 }
 0x1bb   : > { %v4177_v58 = vpop.f32.mrb[5].mxu1 }
 0x1bc   : > { %v4179_v59 = vpop.f32.mrb[6].mxu1 }
 0x1bd   : > { %v4181_v62 = vpop.f32.mrb[7].mxu1 }
 0x1c3   : > { %v4183_v63 = vpop.f32.mrb[8].mxu1 }
 0x1c4   : > { %v4185_v1 = vpop.f32.mrb[9].mxu1 }
 0x1c5   : > { %v4187_v2 = vpop.f32.mrb[10].mxu1 }
 0x1c6   : > { %v4189_v5 = vpop.f32.mrb[11].mxu1 }
 0x1cb   : > { %v4191_v7 = vpop.f32.mrb[12].mxu1 }
 0x1cc   : > { %v4193_v11 = vpop.f32.mrb[13].mxu1 }
 0x1cd   : > { %v4195_v6 = vpop.f32.mrb[14].mxu1 }
 0x1ce   : > { %v4197_v13 = vpop.f32.mrb[15].mxu1 }
 0x1d3   : > { %v4199_v10 = vpop.f32.mrb[16].mxu1 }
 0x1d4   : > { %v4201_v16 = vpop.f32.mrb[17].mxu1 }
 0x1d5   : > { %v4203_v14 = vpop.f32.mrb[18].mxu1 }
 0x1d6   : > { %v4205_v21 = vpop.f32.mrb[19].mxu1 }
 0x1db   : > { %v4207_v29 = vpop.f32.mrb[20].mxu1 }
 0x1dc   : > { %v4209_v15 = vpop.f32.mrb[21].mxu1 }
 0x1dd   : > { %v4211_v17 = vpop.f32.mrb[22].mxu1 }
 0x1de   : > { %v4213_v33 = vpop.f32.mrb[23].mxu1 }
 0x1e3   : > { %v4215_v37 = vpop.f32.mrb[24].mxu1 }
 0x1e4   : > { %v4217_v43 = vpop.f32.mrb[25].mxu1 }
 0x1e5   : > { %v4219_v53 = vpop.f32.mrb[26].mxu1 }
 0x1e6   : > { %v4221_v18 = vpop.f32.mrb[27].mxu1 }
 0x1eb   : > { %v4223_v19 = vpop.f32.mrb[28].mxu1 }
 0x1ec   : > { %v4225_v56 = vpop.f32.mrb[29].mxu1 }
 0x1ed   : > { %v4227_v60 = vpop.f32.mrb[30].mxu1 }
 0x1ee   : > { %v4229_v4 = vpop.f32.mrb[31].mxu1 }
 0x1f3   : > { %v4233_v20 = vpop.f32.mrb[32].mxu1 }
 0x1f4   : > { %v4237_v22 = vpop.f32.mrb[33].mxu1 }
 0x1f5   : > { %v4239_v24 = vpop.f32.mrb[34].mxu1 }
 0x1f6   : > { %v4241_v40 = vpop.f32.mrb[35].mxu1 }
 0x1fc   : > { %v4247_v31 = vpop.f32.mrb[36].mxu1 }
 0x1fd   : > { %v4249_v52 = vpop.f32.mrb[37].mxu1 }
 0x1fe   : > { %v4251_v8 = vpop.f32.mrb[38].mxu1 }
 0x1ff   : > { %v4253_v32 = vpop.f32.mrb[39].mxu1 }
 0x208   : > { %v1419_v12 = vpop.f32.mrb[8].mxu0 }
 0x209   : > { %v2861_v34 = vadd.f32 %v1419_v12, %v755_v55  ;;  %v1421_v26 = vpop.f32.mrb[9].mxu0 }
 0x20a   : > { %v2863_v46 = vadd.f32 %v1421_v26, %v755_v55  ;;  %v1423_v48 = vpop.f32.mrb[10].mxu0 }
 0x20b   : > { %v2865_v35 = vadd.f32 %v1423_v48, %v760_v28  ;;  %v2862_v0 = vadd.f32 %v2861_v34, %v1572_v61  ;;  %v1425_v3 = vpop.f32.mrb[11].mxu0 }
 0x20c   : > { %v2867_v36 = vadd.f32 %v1425_v3, %v760_v28  ;;  %v2864_v23 = vadd.f32 %v2863_v46, %v1574_v50  ;;  %v775_v3 = vpop.permute.xlu0 %774 }
 0x20d   : > { %v2866_v25 = vadd.f32 %v2865_v35, %v1576_v51  ;;  %v1679_v39 = vmax.f32 %v2862_v0, 0.0 }
 0x20e   : > { %v2868_v38 = vadd.f32 %v2867_v36, %v1578_v54  ;;  %v1680_v44 = vmax.f32 %v2864_v23, 0.0  ;;  %v3197_v54 = vld [vmem:[%s4656_s3 + $0x4] ss:$8 sps:$4 sm:$0xff]  }
 0x20f   : > { %v1681_v42 = vmax.f32 %v2866_v25, 0.0  ;;  %2798 = vmatprep.mubr.msk.bf16.mxu1 %vm2111_vm0, %v3197_v54 }
 0x210   : > { %v1682_v45 = vmax.f32 %v2868_v38, 0.0  ;;  %v1429_v49 = vpop.f32.mrb[12].mxu0 }
 0x211   : > { %v4255_v30 = vpack.c.bf16 %v1681_v42, %v1679_v39  ;;  %v2869_v12 = vadd.f32 %v1429_v49, %v765_v47  ;;  %v1431_v27 = vpop.f32.mrb[13].mxu0  ;;  %v780_v42 = vpop.permute.xlu1 %779 }
 0x212   : > { %v4257_v55 = vpack.c.bf16 %v1682_v45, %v1680_v44  ;;  %v2871_v26 = vadd.f32 %v1431_v27, %v765_v47  ;;  %v1433_v61 = vpop.f32.mrb[14].mxu0 }
 0x213   : > { %v2873_v34 = vadd.f32 %v1433_v61, %v770_v41  ;;  %v2870_v50 = vadd.f32 %v2869_v12, %v4175_v57  ;;  %v1435_v51 = vpop.f32.mrb[15].mxu0 }
 0x214   : > { %v2875_v28 = vadd.f32 %v1435_v51, %v770_v41  ;;  %v2872_v46 = vadd.f32 %v2871_v26, %v4177_v58 }
 0x215   : > { %v2874_v48 = vadd.f32 %v2873_v34, %v4179_v59  ;;  %v1683_v27 = vmax.f32 %v2870_v50, 0.0  ;;  %v785_v50 = vpop.permute.xlu0 %784 }
 0x216   : > { %v2876_v35 = vadd.f32 %v2875_v28, %v4181_v62  ;;  %v1684_v36 = vmax.f32 %v2872_v46, 0.0 }
 0x217   : > { %v1685_v0 = vmax.f32 %v2874_v48, 0.0 }
 0x218   : > { %v1686_v57 = vmax.f32 %v2876_v35, 0.0  ;;  %v1439_v23 = vpop.f32.mrb[16].mxu0 }
 0x219   : > { %v4267_v25 = vpack.c.bf16 %v1685_v0, %v1683_v27  ;;  %v2877_v38 = vadd.f32 %v1439_v23, %v775_v3  ;;  %v1441_v39 = vpop.f32.mrb[17].mxu0  ;;  %v790_v27 = vpop.permute.xlu1 %789 }
 0x21a   : > { %v4269_v41 = vpack.c.bf16 %v1686_v57, %v1684_v36  ;;  %v2879_v58 = vadd.f32 %v1441_v39, %v775_v3  ;;  %v1443_v47 = vpop.f32.mrb[18].mxu0 }
 0x21b   : > { %v2881_v59 = vadd.f32 %v1443_v47, %v780_v42  ;;  %v2878_v44 = vadd.f32 %v2877_v38, %v4183_v63  ;;  %v1445_v45 = vpop.f32.mrb[19].mxu0 }
 0x21c   : > { %v2883_v62 = vadd.f32 %v1445_v45, %v780_v42  ;;  %v2880_v49 = vadd.f32 %v2879_v58, %v4185_v1  ;;  %v795_v58 = vpop.permute.xlu0 %794 }
 0x21d   : > { %v2882_v12 = vadd.f32 %v2881_v59, %v4187_v2  ;;  %v1687_v61 = vmax.f32 %v2878_v44, 0.0 }
 0x21e   : > { %v2884_v26 = vadd.f32 %v2883_v62, %v4189_v5  ;;  %v1688_v51 = vmax.f32 %v2880_v49, 0.0 }
 0x21f   : > { %v1689_v34 = vmax.f32 %v2882_v12, 0.0  ;;  %v800_v12 = vpop.permute.xlu1 %799 }
 0x220   : > { %v1690_v54 = vmax.f32 %v2884_v26, 0.0  ;;  %v1449_v28 = vpop.f32.mrb[20].mxu0 }
 0x221   : > { %v4275_v46 = vpack.c.bf16 %v1689_v34, %v1687_v61  ;;  %v2885_v48 = vadd.f32 %v1449_v28, %v785_v50  ;;  %v1451_v35 = vpop.f32.mrb[21].mxu0 }
 0x222   : > { %v4277_v63 = vpack.c.bf16 %v1690_v54, %v1688_v51  ;;  %v2887_v0 = vadd.f32 %v1451_v35, %v785_v50  ;;  %v1453_v3 = vpop.f32.mrb[22].mxu0  ;;  %v805_v35 = vpop.permute.xlu0 %804 }
 0x223   : > { %v2889_v1 = vadd.f32 %v1453_v3, %v790_v27  ;;  %v2886_v2 = vadd.f32 %v2885_v48, %v4191_v7  ;;  %v1455_v36 = vpop.f32.mrb[23].mxu0 }
 0x224   : > { %v2891_v5 = vadd.f32 %v1455_v36, %v790_v27  ;;  %v2888_v57 = vadd.f32 %v2887_v0, %v4193_v11 }
 0x225   : > { %v2890_v23 = vadd.f32 %v2889_v1, %v4195_v6  ;;  %v1691_v39 = vmax.f32 %v2886_v2, 0.0 }
 0x226   : > { %v2892_v38 = vadd.f32 %v2891_v5, %v4197_v13  ;;  %v1692_v47 = vmax.f32 %v2888_v57, 0.0  ;;  %v810_v5 = vpop.permute.xlu1 %809 }
 0x227   : > { %v1693_v42 = vmax.f32 %v2890_v23, 0.0 }
 0x228   : > { %v1694_v59 = vmax.f32 %v2892_v38, 0.0  ;;  %v1459_v44 = vpop.f32.mrb[24].mxu0 }
 0x229   : > { %v4283_v45 = vpack.c.bf16 %v1693_v42, %v1691_v39  ;;  %v2893_v62 = vadd.f32 %v1459_v44, %v795_v58  ;;  %v1461_v49 = vpop.f32.mrb[25].mxu0  ;;  %v815_v44 = vpop.permute.xlu0 %814 }
 0x22a   : > { %v4285_v7 = vpack.c.bf16 %v1694_v59, %v1692_v47  ;;  %v2895_v26 = vadd.f32 %v1461_v49, %v795_v58  ;;  %v1463_v61 = vpop.f32.mrb[26].mxu0 }
 0x22b   : > { %v2897_v11 = vadd.f32 %v1463_v61, %v800_v12  ;;  %v2894_v6 = vadd.f32 %v2893_v62, %v4199_v10  ;;  %v1465_v34 = vpop.f32.mrb[27].mxu0 }
 0x22c   : > { %v2899_v13 = vadd.f32 %v1465_v34, %v800_v12  ;;  %v2896_v50 = vadd.f32 %v2895_v26, %v4201_v16 }
 0x22d   : > { %v2898_v51 = vadd.f32 %v2897_v11, %v4203_v14  ;;  %v1695_v28 = vmax.f32 %v2894_v6, 0.0  ;;  %v820_v6 = vpop.permute.xlu1 %819 }
 0x22e   : > { %v2900_v54 = vadd.f32 %v2899_v13, %v4205_v21  ;;  %v1696_v27 = vmax.f32 %v2896_v50, 0.0 }
 0x22f   : > { %v1697_v48 = vmax.f32 %v2898_v51, 0.0 }
 0x230   : > { %v1698_v0 = vmax.f32 %v2900_v54, 0.0  ;;  %v1469_v3 = vpop.f32.mrb[28].mxu0 }
 0x231   : > { %v4291_v1 = vpack.c.bf16 %v1697_v48, %v1695_v28  ;;  %v2901_v2 = vadd.f32 %v1469_v3, %v805_v35  ;;  %v1471_v36 = vpop.f32.mrb[29].mxu0 }
 0x232   : > { %v4293_v10 = vpack.c.bf16 %v1698_v0, %v1696_v27  ;;  %v2903_v57 = vadd.f32 %v1471_v36, %v805_v35  ;;  %v1473_v23 = vpop.f32.mrb[30].mxu0  ;;  %v825_v27 = vpop.permute.xlu0 %824 }
 0x233   : > { %v2905_v16 = vadd.f32 %v1473_v23, %v810_v5  ;;  %v2902_v14 = vadd.f32 %v2901_v2, %v4207_v29  ;;  %v1475_v38 = vpop.f32.mrb[31].mxu0  ;;  %v830_v23 = vpop.permute.xlu1 %829 }
 0x234   : > { %v2907_v21 = vadd.f32 %v1475_v38, %v810_v5  ;;  %v2904_v39 = vadd.f32 %v2903_v57, %v4209_v15 }
 0x235   : > { %v2906_v42 = vadd.f32 %v2905_v16, %v4211_v17  ;;  %v1699_v47 = vmax.f32 %v2902_v14, 0.0 }
 0x236   : > { %v2908_v58 = vadd.f32 %v2907_v21, %v4213_v33  ;;  %v1700_v62 = vmax.f32 %v2904_v39, 0.0 }
 0x237   : > { %v1701_v59 = vmax.f32 %v2906_v42, 0.0 }
 0x238   : > { %v1702_v49 = vmax.f32 %v2908_v58, 0.0  ;;  %v1479_v12 = vpop.f32.mrb[32].mxu0 }
 0x239   : > { %v4299_v26 = vpack.c.bf16 %v1701_v59, %v1699_v47  ;;  %v2909_v61 = vadd.f32 %v1479_v12, %v815_v44  ;;  %v1481_v11 = vpop.f32.mrb[33].mxu0  ;;  %v835_v59 = vpop.permute.xlu0 %834 }
 0x23a   : > { %v4301_v29 = vpack.c.bf16 %v1702_v49, %v1700_v62  ;;  %v2911_v34 = vadd.f32 %v1481_v11, %v815_v44  ;;  %v1483_v13 = vpop.f32.mrb[34].mxu0 }
 0x23b   : > { %v2913_v15 = vadd.f32 %v1483_v13, %v820_v6  ;;  %v2910_v17 = vadd.f32 %v2909_v61, %v4215_v37  ;;  %v1485_v50 = vpop.f32.mrb[35].mxu0 }
 0x23c   : > { %v2915_v33 = vadd.f32 %v1485_v50, %v820_v6  ;;  %v2912_v51 = vadd.f32 %v2911_v34, %v4217_v43  ;;  %v840_v6 = vpop.permute.xlu1 %839 }
 0x23d   : > { %v2914_v54 = vadd.f32 %v2913_v15, %v4219_v53  ;;  %v1703_v48 = vmax.f32 %v2910_v17, 0.0 }
 0x23e   : > { %v2916_v28 = vadd.f32 %v2915_v33, %v4221_v18  ;;  %v1704_v0 = vmax.f32 %v2912_v51, 0.0 }
 0x23f   : > { %v1705_v35 = vmax.f32 %v2914_v54, 0.0 }
 0x240   : > { %v1706_v3 = vmax.f32 %v2916_v28, 0.0  ;;  %v1489_v2 = vpop.f32.mrb[36].mxu0  ;;  %v845_v28 = vpop.permute.xlu0 %844 }
 0x241   : > { %v4307_v36 = vpack.c.bf16 %v1705_v35, %v1703_v48  ;;  %v2917_v5 = vadd.f32 %v1489_v2, %v825_v27  ;;  %v1491_v57 = vpop.f32.mrb[37].mxu0 }
 0x242   : > { %v4309_v37 = vpack.c.bf16 %v1706_v3, %v1704_v0  ;;  %v2919_v16 = vadd.f32 %v1491_v57, %v825_v27  ;;  %v1493_v14 = vpop.f32.mrb[38].mxu0 }
 0x243   : > { %v2921_v43 = vadd.f32 %v1493_v14, %v830_v23  ;;  %v2918_v53 = vadd.f32 %v2917_v5, %v4223_v19  ;;  %v1495_v38 = vpop.f32.mrb[39].mxu0  ;;  %v850_v5 = vpop.permute.xlu1 %849 }
 0x244   : > { %v2923_v18 = vadd.f32 %v1495_v38, %v830_v23  ;;  %v2920_v21 = vadd.f32 %v2919_v16, %v4225_v56 }
 0x245   : > { %v2922_v39 = vadd.f32 %v2921_v43, %v4227_v60  ;;  %v1707_v58 = vmax.f32 %v2918_v53, 0.0 }
 0x246   : > { %v2924_v42 = vadd.f32 %v2923_v18, %v4229_v4  ;;  %v1708_v44 = vmax.f32 %v2920_v21, 0.0 }
 0x247   : > { %v1709_v47 = vmax.f32 %v2922_v39, 0.0 }
 0x248   : > { %v1710_v62 = vmax.f32 %v2924_v42, 0.0  ;;  %v1499_v49 = vpop.f32.mrb[40].mxu0 }
 0x249   : > { %v4315_v12 = vpack.c.bf16 %v1709_v47, %v1707_v58  ;;  %v2925_v61 = vadd.f32 %v1499_v49, %v835_v59  ;;  %v1501_v11 = vpop.f32.mrb[41].mxu0  ;;  %v4699_v49 = vld [vmem:[#allocation18_spill] sm:$0xff] }
 0x24a   : > { %v4317_v19 = vpack.c.bf16 %v1710_v62, %v1708_v44  ;;  %v2927_v34 = vadd.f32 %v1501_v11, %v835_v59  ;;  %v1503_v13 = vpop.f32.mrb[42].mxu0 }
 0x24b   : > { %v2929_v56 = vadd.f32 %v1503_v13, %v840_v6  ;;  %v2926_v60 = vadd.f32 %v2925_v61, %v4233_v20  ;;  %v1505_v15 = vpop.f32.mrb[43].mxu0 }
 0x24c   : > { %v2931_v4 = vadd.f32 %v1505_v15, %v840_v6  ;;  %v2928_v17 = vadd.f32 %v2927_v34, %v4237_v22  ;;  %v4700_v15 = vld [vmem:[#allocation17_spill] sm:$0xff] }
 0x24d   : > { %v2930_v50 = vadd.f32 %v2929_v56, %v4239_v24  ;;  %v1711_v51 = vmax.f32 %v2926_v60, 0.0 }
 0x24e   : > { %v2932_v33 = vadd.f32 %v2931_v4, %v4241_v40  ;;  %v1712_v48 = vmax.f32 %v2928_v17, 0.0 }
 0x24f   : > { %v1713_v54 = vmax.f32 %v2930_v50, 0.0 }
 0x250   : > { %v1714_v35 = vmax.f32 %v2932_v33, 0.0  ;;  %v1509_v27 = vpop.f32.mrb[44].mxu0 }
 0x251   : > { %v4323_v0 = vpack.c.bf16 %v1713_v54, %v1711_v51  ;;  %v2933_v3 = vadd.f32 %v1509_v27, %v845_v28  ;;  %v1511_v2 = vpop.f32.mrb[45].mxu0 }
 0x252   : > { %v4325_v20 = vpack.c.bf16 %v1714_v35, %v1712_v48  ;;  %v2935_v57 = vadd.f32 %v1511_v2, %v845_v28  ;;  %v1513_v23 = vpop.f32.mrb[46].mxu0 }
 0x253   : > { %v2937_v22 = vadd.f32 %v1513_v23, %v850_v5  ;;  %v2934_v24 = vadd.f32 %v2933_v3, %v4247_v31  ;;  %v1515_v16 = vpop.f32.mrb[47].mxu0  ;;  %v3225_v23 = vld [vmem:[%s4656_s3 + $0xa4] ss:$8 sps:$4 sm:$0xff]  }
 0x254   : > { %v2939_v40 = vadd.f32 %v1515_v16, %v850_v5  ;;  %v2936_v14 = vadd.f32 %v2935_v57, %v4249_v52  ;;  %v3224_v57 = vld [vmem:[%s4656_s3 + $0x90] ss:$8 sps:$4 sm:$0xff]  }
 0x255   : > { %v2938_v43 = vadd.f32 %v2937_v22, %v4251_v8  ;;  %v1715_v38 = vmax.f32 %v2934_v24, 0.0  ;;  %v3227_v22 = vld [vmem:[%s4656_s3 + $0xa0] ss:$8 sps:$4 sm:$0xff]   ;;  %v3228_v24 = vld [vmem:[%s4656_s3 + $0xb4] ss:$8 sps:$4 sm:$0xff]  }
 0x256   : > { %v2940_v53 = vadd.f32 %v2939_v40, %v4253_v32  ;;  %v1716_v21 = vmax.f32 %v2936_v14, 0.0  ;;  %v3230_v16 = vld [vmem:[%s4656_s3 + $0xb0] ss:$8 sps:$4 sm:$0xff]   ;;  %v3231_v40 = vld [vmem:[%s4656_s3 + $0xc4] ss:$8 sps:$4 sm:$0xff]  }
 0x257   : > { %v1717_v18 = vmax.f32 %v2938_v43, 0.0  ;;  %v3233_v14 = vld [vmem:[%s4656_s3 + $0xc0] ss:$8 sps:$4 sm:$0xff]   ;;  %v3234_v43 = vld [vmem:[%s4656_s3 + $0xd4] ss:$8 sps:$4 sm:$0xff]  }
 0x258   : > { %v1718_v39 = vmax.f32 %v2940_v53, 0.0  ;;  %v1552_v42 = vpop.f32.mrb[0].mxu0  ;;  %v3236_v53 = vld [vmem:[%s4656_s3 + $0xd0] ss:$8 sps:$4 sm:$0xff]  }
 0x259   : > { %v1773_v58 = vpack.c.bf16 %v1717_v18, %v1715_v38  ;;  %v2853_v47 = vadd.f32 %v1552_v42, %v4231_v9  ;;  %v1554_v59 = vpop.f32.mrb[1].mxu0  ;;  %v3237_v38 = vld [vmem:[%s4656_s3 + $0xe4] ss:$8 sps:$4 sm:$0xff]   ;;  %v3239_v18 = vld [vmem:[%s4656_s3 + $0xe0] ss:$8 sps:$4 sm:$0xff]   ;;  %v1810_v42 = vpop.permute.xlu0 %1809 }
 0x25a   : > { %v1774_v44 = vpack.c.bf16 %v1718_v39, %v1716_v21  ;;  %v2854_v31 = vadd.f32 %v1554_v59, %v4231_v9  ;;  %v1556_v62 = vpop.f32.mrb[2].mxu0  ;;  %v4701_v9 = vld [vmem:[#allocation19_spill] sm:$0xff] }
 0x25b   : > { %v2855_v61 = vadd.f32 %v1556_v62, %v4699_v49  ;;  %v1558_v52 = vpop.f32.mrb[3].mxu0  ;;  %v1671_v11 = vmax.f32 %v2853_v47, 0.0  ;;  %v3240_v21 = vld [vmem:[%s4656_s3 + $0xf4] ss:$8 sps:$4 sm:$0xff]   ;;  %v3242_v39 = vld [vmem:[%s4656_s3 + $0xf0] ss:$8 sps:$4 sm:$0xff]   ;;  %v1815_v62 = vpop.permute.xlu1 %1814 }
 0x25c   : > { %v2856_v8 = vadd.f32 %v1558_v52, %v4699_v49  ;;  %v1672_v6 = vmax.f32 %v2854_v31, 0.0  ;;  %v2353_v47 = vld [vmem:[%s3681_s18] sm:$0xff]  ;;  %v2354_v31 = vld [vmem:[%s3681_s18 + $0x8] sm:$0xff]  ;;  %v2355_v52 = vld [vmem:[%s3681_s18 + $0x10] sm:$0xff] }
 0x25d   : > { %v1673_v32 = vmax.f32 %v2855_v61, 0.0 }
 0x25e   : > { %v1674_v34 = vmax.f32 %v2856_v8, 0.0 }
 0x25f   : > { %v1751_v13 = vpack.c.bf16 %v1673_v32, %v1671_v11 }
 0x260   : > { %v1752_v56 = vpack.c.bf16 %v1674_v34, %v1672_v6  ;;  %v1562_v60 = vpop.f32.mrb[4].mxu0  ;;  %v2356_v6 = vld [vmem:[%s3681_s18 + $0x18] sm:$0xff] }
 0x261   : > { %v2857_v4 = vadd.f32 %v1562_v60, %v4700_v15  ;;  %v1564_v17 = vpop.f32.mrb[5].mxu0 }
 0x262   : > { %v2858_v50 = vadd.f32 %v1564_v17, %v4700_v15  ;;  %v1566_v33 = vpop.f32.mrb[6].mxu0  ;;  %2160 = vmatprep.subr.bf16.mxu1 %v1752_v56  ;;  %v1820_v15 = vpop.permute.xlu0 %1819  ;;  %v2357_v17 = vld [vmem:[%s3681_s18 + $0x20] sm:$0xff] }
 0x263   : > { %v2859_v51 = vadd.f32 %v1566_v33, %v4701_v9  ;;  %v1568_v54 = vpop.f32.mrb[7].mxu0  ;;  %2161 = vmatpush1.bf16.msra.mxu1 %v1751_v13  ;;  %v1675_v48 = vmax.f32 %v2857_v4, 0.0 }
 0x264   : > { %v2860_v28 = vadd.f32 %v1568_v54, %v4701_v9  ;;  %v1676_v27 = vmax.f32 %v2858_v50, 0.0  ;;  %v2358_v9 = vld [vmem:[%s3681_s18 + $0x28] sm:$0xff] }
 0x265   : > { %v1677_v35 = vmax.f32 %v2859_v51, 0.0  ;;  %v1825_v51 = vpop.permute.xlu1 %1824 }
 0x266   : > { %v1678_v3 = vmax.f32 %v2860_v28, 0.0 }
 0x267   : > { %v1753_v2 = vpack.c.bf16 %v1677_v35, %v1675_v48  ;;  %v2359_v48 = vld [vmem:[%s3681_s18 + $0x30] sm:$0xff] }
 0x268   : > { %v1754_v5 = vpack.c.bf16 %v1678_v3, %v1676_v27 }
 0x26a   : > { %2162 = vmatprep.subr.bf16.mxu1 %v1754_v5 }
 0x26b   : > { %2163 = vmatpush1.bf16.msra.mxu1 %v1753_v2  ;;  %v2360_v2 = vld [vmem:[%s3681_s18 + $0x38] sm:$0xff] }
 0x26c   : > { %2164 = vmatprep.subr.bf16.mxu1 %v4257_v55  ;;  %v3198_v55 = vld [vmem:[%s4656_s3 + $0x14] ss:$8 sps:$4 sm:$0xff]  }
 0x26f   : > { %2165 = vmatpush1.bf16.msra.mxu1 %v4255_v30  ;;  %v3195_v30 = vld [vmem:[%s4656_s3] ss:$8 sps:$4 sm:$0xff]  }
 0x270   : > { %2166 = vmatprep.subr.bf16.mxu1 %v4269_v41  ;;  %v3201_v41 = vld [vmem:[%s4656_s3 + $0x24] ss:$8 sps:$4 sm:$0xff]  }
 0x273   : > { %2167 = vmatpush1.bf16.msra.mxu1 %v4267_v25  ;;  %v3200_v25 = vld [vmem:[%s4656_s3 + $0x10] ss:$8 sps:$4 sm:$0xff]  }
 0x274   : > { %2168 = vmatprep.subr.bf16.mxu1 %v4277_v63  ;;  %v3204_v63 = vld [vmem:[%s4656_s3 + $0x34] ss:$8 sps:$4 sm:$0xff]  }
 0x277   : > { %2169 = vmatpush1.bf16.msra.mxu1 %v4275_v46  ;;  %v3203_v46 = vld [vmem:[%s4656_s3 + $0x20] ss:$8 sps:$4 sm:$0xff]  }
 0x278   : > { %2170 = vmatprep.subr.bf16.mxu1 %v4285_v7  ;;  %v3207_v7 = vld [vmem:[%s4656_s3 + $0x44] ss:$8 sps:$4 sm:$0xff]  }
 0x27b   : > { %2171 = vmatpush1.bf16.msra.mxu1 %v4283_v45  ;;  %v3206_v45 = vld [vmem:[%s4656_s3 + $0x30] ss:$8 sps:$4 sm:$0xff]  }
 0x27c   : > { %2172 = vmatprep.subr.bf16.mxu1 %v4293_v10  ;;  %v3210_v10 = vld [vmem:[%s4656_s3 + $0x54] ss:$8 sps:$4 sm:$0xff]  }
 0x27f   : > { %2173 = vmatpush1.bf16.msra.mxu1 %v4291_v1  ;;  %v3209_v1 = vld [vmem:[%s4656_s3 + $0x40] ss:$8 sps:$4 sm:$0xff]  }
 0x280   : > { %2174 = vmatprep.subr.bf16.mxu1 %v4301_v29  ;;  %v3213_v29 = vld [vmem:[%s4656_s3 + $0x64] ss:$8 sps:$4 sm:$0xff]  }
 0x283   : > { %2175 = vmatpush1.bf16.msra.mxu1 %v4299_v26  ;;  %v3212_v26 = vld [vmem:[%s4656_s3 + $0x50] ss:$8 sps:$4 sm:$0xff]  }
 0x284   : > { %2176 = vmatprep.subr.bf16.mxu1 %v4309_v37  ;;  %v3216_v37 = vld [vmem:[%s4656_s3 + $0x74] ss:$8 sps:$4 sm:$0xff]  }
 0x287   : > { %2177 = vmatpush1.bf16.msra.mxu1 %v4307_v36  ;;  %v3215_v36 = vld [vmem:[%s4656_s3 + $0x60] ss:$8 sps:$4 sm:$0xff]  }
 0x288   : > { %2178 = vmatprep.subr.bf16.mxu1 %v4317_v19  ;;  %v3219_v19 = vld [vmem:[%s4656_s3 + $0x84] ss:$8 sps:$4 sm:$0xff]  }
 0x28b   : > { %2179 = vmatpush1.bf16.msra.mxu1 %v4315_v12  ;;  %v3218_v12 = vld [vmem:[%s4656_s3 + $0x70] ss:$8 sps:$4 sm:$0xff]  }
 0x28c   : > { %2180 = vmatprep.subr.bf16.mxu1 %v4325_v20  ;;  %v3222_v20 = vld [vmem:[%s4656_s3 + $0x94] ss:$8 sps:$4 sm:$0xff]  }
 0x28f   : > { %2181 = vmatpush1.bf16.msra.mxu1 %v4323_v0  ;;  %v3221_v0 = vld [vmem:[%s4656_s3 + $0x80] ss:$8 sps:$4 sm:$0xff]  }
 0x290   : > { %2182 = vmatprep.subr.bf16.mxu1 %v1774_v44 }
 0x293   : > { %2183 = vmatpush1.bf16.msra.mxu1 %v1773_v58 }
 0x296   : > { %2193 = vmatmul.mubr.bf16.vlgmr.msra.gmra.mrb[40].mxu1 %v3195_v30 }
 0x297   : > { %2799 = vmatprep.mubr.msk.bf16.mxu1 %vm2111_vm0, %v3198_v55 }
 0x29e   : > { %2203 = vmatmul.mubr.bf16.gmra.mrb[44].mxu1 %v3200_v25 }
 0x29f   : > { %2800 = vmatprep.mubr.msk.bf16.mxu1 %vm2111_vm0, %v3201_v41  ;;  %v1830_v41 = vpop.permute.xlu0 %1829 }
 0x2a6   : > { %2213 = vmatmul.mubr.bf16.gmra.mrb[48].mxu1 %v3203_v46 }
 0x2a7   : > { %2801 = vmatprep.mubr.msk.bf16.mxu1 %vm2111_vm0, %v3204_v63  ;;  %v2361_v63 = vld [vmem:[%s3681_s18 + $0x40] sm:$0xff] }
 0x2ae   : > { %2223 = vmatmul.mubr.bf16.gmra.mrb[52].mxu1 %v3206_v45 }
 0x2af   : > { %2802 = vmatprep.mubr.msk.bf16.mxu1 %vm2111_vm0, %v3207_v7 }
 0x2b6   : > { %2233 = vmatmul.mubr.bf16.gmra.mrb[56].mxu1 %v3209_v1  ;;  %v2362_v1 = vld [vmem:[%s3681_s18 + $0x48] sm:$0xff] }
 0x2b7   : > { %2803 = vmatprep.mubr.msk.bf16.mxu1 %vm2111_vm0, %v3210_v10  ;;  %v1835_v10 = vpop.permute.xlu1 %1834 }
 0x2be   : > { %2243 = vmatmul.mubr.bf16.gmra.mrb[60].mxu1 %v3212_v26 }
 0x2bf   : > { %2804 = vmatprep.mubr.msk.bf16.mxu1 %vm2111_vm0, %v3213_v29 }
 0x2c6   : > { %2253 = vmatmul.mubr.bf16.gmra.mrb[64].mxu1 %v3215_v36  ;;  %v2363_v36 = vld [vmem:[%s3681_s18 + $0x50] sm:$0xff] }
 0x2c7   : > { %2805 = vmatprep.mubr.msk.bf16.mxu1 %vm2111_vm0, %v3216_v37 }
 0x2ce   : > { %2263 = vmatmul.mubr.bf16.gmra.mrb[68].mxu1 %v3218_v12 }
 0x2cf   : > { %2806 = vmatprep.mubr.msk.bf16.mxu1 %vm2111_vm0, %v3219_v19 }
 0x2d6   : > { %2273 = vmatmul.mubr.bf16.gmra.mrb[72].mxu1 %v3221_v0  ;;  %v2364_v0 = vld [vmem:[%s3681_s18 + $0x58] sm:$0xff] }
 0x2d7   : > { %2807 = vmatprep.mubr.msk.bf16.mxu1 %vm2111_vm0, %v3222_v20 }
 0x2de   : > { %2283 = vmatmul.mubr.bf16.gmra.mrb[76].mxu1 %v3224_v57 }
 0x2df   : > { %2808 = vmatprep.mubr.msk.bf16.mxu1 %vm2111_vm0, %v3225_v23 }
 0x2e6   : > { %2293 = vmatmul.mubr.bf16.gmra.mrb[80].mxu1 %v3227_v22 }
 0x2e7   : > { %2809 = vmatprep.mubr.msk.bf16.mxu1 %vm2111_vm0, %v3228_v24  ;;  %v1840_v24 = vpop.permute.xlu0 %1839 }
 0x2ee   : > { %2303 = vmatmul.mubr.bf16.gmra.mrb[84].mxu1 %v3230_v16 }
 0x2ef   : > { %2810 = vmatprep.mubr.msk.bf16.mxu1 %vm2111_vm0, %v3231_v40  ;;  %v2365_v40 = vld [vmem:[%s3681_s18 + $0x60] sm:$0xff] }
 0x2f6   : > { %2313 = vmatmul.mubr.bf16.gmra.mrb[88].mxu1 %v3233_v14 }
 0x2f7   : > { %2811 = vmatprep.mubr.msk.bf16.mxu1 %vm2111_vm0, %v3234_v43 }
 0x2fe   : > { %2323 = vmatmul.mubr.bf16.gmra.mrb[92].mxu1 %v3236_v53  ;;  %v2366_v53 = vld [vmem:[%s3681_s18 + $0x68] sm:$0xff] }
 0x2ff   : > { %2812 = vmatprep.mubr.msk.bf16.mxu1 %vm2111_vm0, %v3237_v38  ;;  %v1845_v38 = vpop.permute.xlu1 %1844 }
 0x306   : > { %2333 = vmatmul.mubr.bf16.gmra.mrb[96].mxu1 %v3239_v18 }
 0x307   : > { %2813 = vmatprep.mubr.msk.bf16.mxu1 %vm2111_vm0, %v3240_v21 }
 0x30e   : > { %2343 = vmatmul.mubr.bf16.gmra.mrb[100].mxu1 %v3242_v39  ;;  %v2367_v39 = vld [vmem:[%s3681_s18 + $0x70] sm:$0xff] }
 0x369   : > { %v2194_v58 = vpop.f32.mrb[40].mxu1 }
 0x36a   : > { %v2195_v59 = vadd.f32 %v2194_v58, %v1810_v42  ;;  %v2196_v44 = vpop.f32.mrb[41].mxu1 }
 0x36b   : > { %v2197_v49 = vadd.f32 %v2196_v44, %v1810_v42  ;;  %v2198_v61 = vpop.f32.mrb[42].mxu1 }
 0x36c   : > { %v2417_v8 = vadd.f32 %v2353_v47, %v2195_v59  ;;  %v2199_v11 = vadd.f32 %v2198_v61, %v1815_v62  ;;  %v2200_v32 = vpop.f32.mrb[43].mxu1  ;;  %v2368_v59 = vld [vmem:[%s3681_s18 + $0x78] sm:$0xff]  ;;  %v1850_v61 = vpop.permute.xlu0 %1849 }
 0x36d   : > { %v2418_v34 = vadd.f32 %v2354_v31, %v2197_v49  ;;  %v2201_v13 = vadd.f32 %v2200_v32, %v1815_v62 }
 0x36e   : > { %2481 = vst [vmem:[%s4471_s29] sm:$0xff] %v2417_v8  ;;  %v2419_v56 = vadd.f32 %v2355_v52, %v2199_v11  ;;  %v2369_v8 = vld [vmem:[%s3681_s18 + $0x80] sm:$0xff] }
 0x36f   : > { %2482 = vst [vmem:[%s4471_s29 + $0x8] sm:$0xff] %v2418_v34  ;;  %v2420_v60 = vadd.f32 %v2356_v6, %v2201_v13  ;;  %v2370_v6 = vld [vmem:[%s3681_s18 + $0x88] sm:$0xff]  ;;  %v1855_v34 = vpop.permute.xlu1 %1854 }
 0x370   : > { %2483 = vst [vmem:[%s4471_s29 + $0x10] sm:$0xff] %v2419_v56 }
 0x371   : > { %2484 = vst [vmem:[%s4471_s29 + $0x18] sm:$0xff] %v2420_v60  ;;  %v2204_v4 = vpop.f32.mrb[44].mxu1  ;;  %v2371_v60 = vld [vmem:[%s3681_s18 + $0x90] sm:$0xff] }
 0x372   : > { %v2205_v50 = vadd.f32 %v2204_v4, %v1820_v15  ;;  %v2206_v33 = vpop.f32.mrb[45].mxu1 }
 0x373   : > { %v2207_v54 = vadd.f32 %v2206_v33, %v1820_v15  ;;  %v2208_v28 = vpop.f32.mrb[46].mxu1 }
 0x374   : > { %v2421_v35 = vadd.f32 %v2357_v17, %v2205_v50  ;;  %v2209_v27 = vadd.f32 %v2208_v28, %v1825_v51  ;;  %v2210_v3 = vpop.f32.mrb[47].mxu1  ;;  %v2372_v50 = vld [vmem:[%s3681_s18 + $0x98] sm:$0xff]  ;;  %v1860_v28 = vpop.permute.xlu0 %1859 }
 0x375   : > { %v2422_v5 = vadd.f32 %v2358_v9, %v2207_v54  ;;  %v2211_v30 = vadd.f32 %v2210_v3, %v1825_v51 }
 0x376   : > { %2485 = vst [vmem:[%s4471_s29 + $0x20] sm:$0xff] %v2421_v35  ;;  %v2423_v55 = vadd.f32 %v2359_v48, %v2209_v27  ;;  %v2373_v35 = vld [vmem:[%s3681_s18 + $0xa0] sm:$0xff] }
 0x377   : > { %2486 = vst [vmem:[%s4471_s29 + $0x28] sm:$0xff] %v2422_v5  ;;  %v2424_v25 = vadd.f32 %v2360_v2, %v2211_v30  ;;  %v2374_v2 = vld [vmem:[%s3681_s18 + $0xa8] sm:$0xff]  ;;  %v1865_v5 = vpop.permute.xlu1 %1864 }
 0x378   : > { %2487 = vst [vmem:[%s4471_s29 + $0x30] sm:$0xff] %v2423_v55 }
 0x379   : > { %2488 = vst [vmem:[%s4471_s29 + $0x38] sm:$0xff] %v2424_v25  ;;  %v2214_v46 = vpop.f32.mrb[48].mxu1  ;;  %v2375_v25 = vld [vmem:[%s3681_s18 + $0xb0] sm:$0xff] }
 0x37a   : > { %v2215_v45 = vadd.f32 %v2214_v46, %v1830_v41  ;;  %v2216_v7 = vpop.f32.mrb[49].mxu1 }
 0x37b   : > { %v2217_v26 = vadd.f32 %v2216_v7, %v1830_v41  ;;  %v2218_v29 = vpop.f32.mrb[50].mxu1 }
 0x37c   : > { %v2425_v37 = vadd.f32 %v2361_v63, %v2215_v45  ;;  %v2219_v12 = vadd.f32 %v2218_v29, %v1835_v10  ;;  %v2220_v19 = vpop.f32.mrb[51].mxu1  ;;  %v2376_v45 = vld [vmem:[%s3681_s18 + $0xb8] sm:$0xff]  ;;  %v1870_v29 = vpop.permute.xlu0 %1869 }
 0x37d   : > { %v2426_v20 = vadd.f32 %v2362_v1, %v2217_v26  ;;  %v2221_v57 = vadd.f32 %v2220_v19, %v1835_v10 }
 0x37e   : > { %2489 = vst [vmem:[%s4471_s29 + $0x40] sm:$0xff] %v2425_v37  ;;  %v2427_v23 = vadd.f32 %v2363_v36, %v2219_v12  ;;  %v2377_v37 = vld [vmem:[%s3681_s18 + $0xc0] sm:$0xff] }
 0x37f   : > { %2490 = vst [vmem:[%s4471_s29 + $0x48] sm:$0xff] %v2426_v20  ;;  %v2428_v22 = vadd.f32 %v2364_v0, %v2221_v57  ;;  %v2378_v0 = vld [vmem:[%s3681_s18 + $0xc8] sm:$0xff]  ;;  %v1875_v20 = vpop.permute.xlu1 %1874 }
 0x380   : > { %2491 = vst [vmem:[%s4471_s29 + $0x50] sm:$0xff] %v2427_v23 }
 0x381   : > { %2492 = vst [vmem:[%s4471_s29 + $0x58] sm:$0xff] %v2428_v22  ;;  %v2224_v16 = vpop.f32.mrb[52].mxu1  ;;  %v2379_v22 = vld [vmem:[%s3681_s18 + $0xd0] sm:$0xff] }
 0x382   : > { %v2225_v14 = vadd.f32 %v2224_v16, %v1840_v24  ;;  %v2226_v43 = vpop.f32.mrb[53].mxu1 }
 0x383   : > { %v2227_v18 = vadd.f32 %v2226_v43, %v1840_v24  ;;  %v2228_v21 = vpop.f32.mrb[54].mxu1 }
 0x384   : > { %v2429_v42 = vadd.f32 %v2365_v40, %v2225_v14  ;;  %v2229_v58 = vadd.f32 %v2228_v21, %v1845_v38  ;;  %v2230_v47 = vpop.f32.mrb[55].mxu1  ;;  %v2380_v14 = vld [vmem:[%s3681_s18 + $0xd8] sm:$0xff]  ;;  %v1880_v21 = vpop.permute.xlu0 %1879 }
 0x385   : > { %v2430_v44 = vadd.f32 %v2366_v53, %v2227_v18  ;;  %v2231_v31 = vadd.f32 %v2230_v47, %v1845_v38 }
 0x386   : > { %2493 = vst [vmem:[%s4471_s29 + $0x60] sm:$0xff] %v2429_v42  ;;  %v2431_v62 = vadd.f32 %v2367_v39, %v2229_v58  ;;  %v2381_v42 = vld [vmem:[%s3681_s18 + $0xe0] sm:$0xff] }
 0x387   : > { %2494 = vst [vmem:[%s4471_s29 + $0x68] sm:$0xff] %v2430_v44  ;;  %v2432_v49 = vadd.f32 %v2368_v59, %v2231_v31  ;;  %v2382_v59 = vld [vmem:[%s3681_s18 + $0xe8] sm:$0xff]  ;;  %v1885_v44 = vpop.permute.xlu1 %1884 }
 0x388   : > { %2495 = vst [vmem:[%s4471_s29 + $0x70] sm:$0xff] %v2431_v62 }
 0x389   : > { %2496 = vst [vmem:[%s4471_s29 + $0x78] sm:$0xff] %v2432_v49  ;;  %v2234_v52 = vpop.f32.mrb[56].mxu1  ;;  %v2383_v49 = vld [vmem:[%s3681_s18 + $0xf0] sm:$0xff] }
 0x38a   : > { %v2235_v11 = vadd.f32 %v2234_v52, %v1850_v61  ;;  %v2236_v32 = vpop.f32.mrb[57].mxu1 }
 0x38b   : > { %v2237_v13 = vadd.f32 %v2236_v32, %v1850_v61  ;;  %v2238_v56 = vpop.f32.mrb[58].mxu1 }
 0x38c   : > { %v2433_v15 = vadd.f32 %v2369_v8, %v2235_v11  ;;  %v2239_v4 = vadd.f32 %v2238_v56, %v1855_v34  ;;  %v2240_v17 = vpop.f32.mrb[59].mxu1  ;;  %v2384_v11 = vld [vmem:[%s3681_s18 + $0xf8] sm:$0xff]  ;;  %v1890_v56 = vpop.permute.xlu0 %1889 }
 0x38d   : > { %v2434_v33 = vadd.f32 %v2370_v6, %v2237_v13  ;;  %v2241_v9 = vadd.f32 %v2240_v17, %v1855_v34 }
 0x38e   : > { %2497 = vst [vmem:[%s4471_s29 + $0x80] sm:$0xff] %v2433_v15  ;;  %v2435_v51 = vadd.f32 %v2371_v60, %v2239_v4  ;;  %v2385_v15 = vld [vmem:[%s3681_s18 + $0x100] sm:$0xff] }
 0x38f   : > { %2498 = vst [vmem:[%s4471_s29 + $0x88] sm:$0xff] %v2434_v33  ;;  %v2436_v54 = vadd.f32 %v2372_v50, %v2241_v9  ;;  %v2386_v50 = vld [vmem:[%s3681_s18 + $0x108] sm:$0xff]  ;;  %v1895_v33 = vpop.permute.xlu1 %1894 }
 0x390   : > { %2499 = vst [vmem:[%s4471_s29 + $0x90] sm:$0xff] %v2435_v51 }
 0x391   : > { %2500 = vst [vmem:[%s4471_s29 + $0x98] sm:$0xff] %v2436_v54  ;;  %v2244_v48 = vpop.f32.mrb[60].mxu1  ;;  %v2387_v54 = vld [vmem:[%s3681_s18 + $0x110] sm:$0xff] }
 0x392   : > { %v2245_v27 = vadd.f32 %v2244_v48, %v1860_v28  ;;  %v2246_v3 = vpop.f32.mrb[61].mxu1 }
 0x393   : > { %v2247_v30 = vadd.f32 %v2246_v3, %v1860_v28  ;;  %v2248_v55 = vpop.f32.mrb[62].mxu1 }
 0x394   : > { %v2437_v41 = vadd.f32 %v2373_v35, %v2245_v27  ;;  %v2249_v46 = vadd.f32 %v2248_v55, %v1865_v5  ;;  %v2250_v63 = vpop.f32.mrb[63].mxu1  ;;  %v2388_v27 = vld [vmem:[%s3681_s18 + $0x118] sm:$0xff]  ;;  %v1900_v55 = vpop.permute.xlu0 %1899 }
 0x395   : > { %v2438_v7 = vadd.f32 %v2374_v2, %v2247_v30  ;;  %v2251_v1 = vadd.f32 %v2250_v63, %v1865_v5 }
 0x396   : > { %2501 = vst [vmem:[%s4471_s29 + $0xa0] sm:$0xff] %v2437_v41  ;;  %v2439_v10 = vadd.f32 %v2375_v25, %v2249_v46  ;;  %v2389_v41 = vld [vmem:[%s3681_s18 + $0x120] sm:$0xff] }
 0x397   : > { %2502 = vst [vmem:[%s4471_s29 + $0xa8] sm:$0xff] %v2438_v7  ;;  %v2440_v26 = vadd.f32 %v2376_v45, %v2251_v1  ;;  %v2390_v45 = vld [vmem:[%s3681_s18 + $0x128] sm:$0xff]  ;;  %v1905_v7 = vpop.permute.xlu1 %1904 }
 0x398   : > { %2503 = vst [vmem:[%s4471_s29 + $0xb0] sm:$0xff] %v2439_v10 }
 0x399   : > { %2504 = vst [vmem:[%s4471_s29 + $0xb8] sm:$0xff] %v2440_v26  ;;  %v2254_v36 = vpop.f32.mrb[64].mxu1  ;;  %v2391_v26 = vld [vmem:[%s3681_s18 + $0x130] sm:$0xff] }
 0x39a   : > { %v2255_v12 = vadd.f32 %v2254_v36, %v1870_v29  ;;  %v2256_v19 = vpop.f32.mrb[65].mxu1 }
 0x39b   : > { %v2257_v57 = vadd.f32 %v2256_v19, %v1870_v29  ;;  %v2258_v23 = vpop.f32.mrb[66].mxu1 }
 0x39c   : > { %v2441_v24 = vadd.f32 %v2377_v37, %v2255_v12  ;;  %v2259_v16 = vadd.f32 %v2258_v23, %v1875_v20  ;;  %v2260_v40 = vpop.f32.mrb[67].mxu1  ;;  %v2392_v12 = vld [vmem:[%s3681_s18 + $0x138] sm:$0xff]  ;;  %v1910_v23 = vpop.permute.xlu0 %1909 }
 0x39d   : > { %v2442_v43 = vadd.f32 %v2378_v0, %v2257_v57  ;;  %v2261_v53 = vadd.f32 %v2260_v40, %v1875_v20 }
 0x39e   : > { %2505 = vst [vmem:[%s4471_s29 + $0xc0] sm:$0xff] %v2441_v24  ;;  %v2443_v38 = vadd.f32 %v2379_v22, %v2259_v16  ;;  %v2393_v24 = vld [vmem:[%s3681_s18 + $0x140] sm:$0xff] }
 0x39f   : > { %2506 = vst [vmem:[%s4471_s29 + $0xc8] sm:$0xff] %v2442_v43  ;;  %v2444_v18 = vadd.f32 %v2380_v14, %v2261_v53  ;;  %v2394_v14 = vld [vmem:[%s3681_s18 + $0x148] sm:$0xff]  ;;  %v1915_v43 = vpop.permute.xlu1 %1914 }
 0x3a0   : > { %2507 = vst [vmem:[%s4471_s29 + $0xd0] sm:$0xff] %v2443_v38 }
 0x3a1   : > { %2508 = vst [vmem:[%s4471_s29 + $0xd8] sm:$0xff] %v2444_v18  ;;  %v2264_v39 = vpop.f32.mrb[68].mxu1  ;;  %v2395_v18 = vld [vmem:[%s3681_s18 + $0x150] sm:$0xff] }
 0x3a2   : > { %v2265_v58 = vadd.f32 %v2264_v39, %v1880_v21  ;;  %v2266_v47 = vpop.f32.mrb[69].mxu1 }
 0x3a3   : > { %v2267_v31 = vadd.f32 %v2266_v47, %v1880_v21  ;;  %v2268_v62 = vpop.f32.mrb[70].mxu1 }
 0x3a4   : > { %v2445_v61 = vadd.f32 %v2381_v42, %v2265_v58  ;;  %v2269_v52 = vadd.f32 %v2268_v62, %v1885_v44  ;;  %v2270_v8 = vpop.f32.mrb[71].mxu1  ;;  %v2396_v58 = vld [vmem:[%s3681_s18 + $0x158] sm:$0xff]  ;;  %v1920_v62 = vpop.permute.xlu0 %1919 }
 0x3a5   : > { %v2446_v32 = vadd.f32 %v2382_v59, %v2267_v31  ;;  %v2271_v6 = vadd.f32 %v2270_v8, %v1885_v44 }
 0x3a6   : > { %2509 = vst [vmem:[%s4471_s29 + $0xe0] sm:$0xff] %v2445_v61  ;;  %v2447_v34 = vadd.f32 %v2383_v49, %v2269_v52  ;;  %v2397_v61 = vld [vmem:[%s3681_s18 + $0x160] sm:$0xff] }
 0x3a7   : > { %2510 = vst [vmem:[%s4471_s29 + $0xe8] sm:$0xff] %v2446_v32  ;;  %v2448_v13 = vadd.f32 %v2384_v11, %v2271_v6  ;;  %v2398_v11 = vld [vmem:[%s3681_s18 + $0x168] sm:$0xff]  ;;  %v1925_v32 = vpop.permute.xlu1 %1924 }
 0x3a8   : > { %2511 = vst [vmem:[%s4471_s29 + $0xf0] sm:$0xff] %v2447_v34 }
 0x3a9   : > { %2512 = vst [vmem:[%s4471_s29 + $0xf8] sm:$0xff] %v2448_v13  ;;  %v2274_v60 = vpop.f32.mrb[72].mxu1  ;;  %v2399_v13 = vld [vmem:[%s3681_s18 + $0x170] sm:$0xff] }
 0x3aa   : > { %v2275_v4 = vadd.f32 %v2274_v60, %v1890_v56  ;;  %v2276_v17 = vpop.f32.mrb[73].mxu1 }
 0x3ab   : > { %v2277_v9 = vadd.f32 %v2276_v17, %v1890_v56  ;;  %v2278_v51 = vpop.f32.mrb[74].mxu1 }
 0x3ac   : > { %v2449_v28 = vadd.f32 %v2385_v15, %v2275_v4  ;;  %v2279_v48 = vadd.f32 %v2278_v51, %v1895_v33  ;;  %v2280_v35 = vpop.f32.mrb[75].mxu1  ;;  %v2400_v4 = vld [vmem:[%s3681_s18 + $0x178] sm:$0xff]  ;;  %v1930_v51 = vpop.permute.xlu0 %1929 }
 0x3ad   : > { %v2450_v3 = vadd.f32 %v2386_v50, %v2277_v9  ;;  %v2281_v2 = vadd.f32 %v2280_v35, %v1895_v33 }
 0x3ae   : > { %2513 = vst [vmem:[%s4471_s29 + $0x100] sm:$0xff] %v2449_v28  ;;  %v2451_v5 = vadd.f32 %v2387_v54, %v2279_v48  ;;  %v2401_v28 = vld [vmem:[%s3681_s18 + $0x180] sm:$0xff] }
 0x3af   : > { %2514 = vst [vmem:[%s4471_s29 + $0x108] sm:$0xff] %v2450_v3  ;;  %v2452_v30 = vadd.f32 %v2388_v27, %v2281_v2  ;;  %v2402_v27 = vld [vmem:[%s3681_s18 + $0x188] sm:$0xff]  ;;  %v1935_v3 = vpop.permute.xlu1 %1934 }
 0x3b0   : > { %2515 = vst [vmem:[%s4471_s29 + $0x110] sm:$0xff] %v2451_v5 }
 0x3b1   : > { %2516 = vst [vmem:[%s4471_s29 + $0x118] sm:$0xff] %v2452_v30  ;;  %v2284_v25 = vpop.f32.mrb[76].mxu1  ;;  %v2403_v30 = vld [vmem:[%s3681_s18 + $0x190] sm:$0xff] }
 0x3b2   : > { %v2285_v46 = vadd.f32 %v2284_v25, %v1900_v55  ;;  %v2286_v63 = vpop.f32.mrb[77].mxu1 }
 0x3b3   : > { %v2287_v1 = vadd.f32 %v2286_v63, %v1900_v55  ;;  %v2288_v10 = vpop.f32.mrb[78].mxu1 }
 0x3b4   : > { %v2453_v29 = vadd.f32 %v2389_v41, %v2285_v46  ;;  %v2289_v36 = vadd.f32 %v2288_v10, %v1905_v7  ;;  %v2290_v37 = vpop.f32.mrb[79].mxu1  ;;  %v2404_v46 = vld [vmem:[%s3681_s18 + $0x198] sm:$0xff]  ;;  %v1940_v10 = vpop.permute.xlu0 %1939 }
 0x3b5   : > { %v2454_v19 = vadd.f32 %v2390_v45, %v2287_v1  ;;  %v2291_v0 = vadd.f32 %v2290_v37, %v1905_v7 }
 0x3b6   : > { %2517 = vst [vmem:[%s4471_s29 + $0x120] sm:$0xff] %v2453_v29  ;;  %v2455_v20 = vadd.f32 %v2391_v26, %v2289_v36  ;;  %v2405_v29 = vld [vmem:[%s3681_s18 + $0x1a0] sm:$0xff] }
 0x3b7   : > { %2518 = vst [vmem:[%s4471_s29 + $0x128] sm:$0xff] %v2454_v19  ;;  %v2456_v57 = vadd.f32 %v2392_v12, %v2291_v0  ;;  %v2406_v12 = vld [vmem:[%s3681_s18 + $0x1a8] sm:$0xff]  ;;  %v1945_v19 = vpop.permute.xlu1 %1944 }
 0x3b8   : > { %2519 = vst [vmem:[%s4471_s29 + $0x130] sm:$0xff] %v2455_v20 }
 0x3b9   : > { %2520 = vst [vmem:[%s4471_s29 + $0x138] sm:$0xff] %v2456_v57  ;;  %v2294_v22 = vpop.f32.mrb[80].mxu1  ;;  %v2407_v57 = vld [vmem:[%s3681_s18 + $0x1b0] sm:$0xff] }
 0x3ba   : > { %v2295_v16 = vadd.f32 %v2294_v22, %v1910_v23  ;;  %v2296_v40 = vpop.f32.mrb[81].mxu1 }
 0x3bb   : > { %v2297_v53 = vadd.f32 %v2296_v40, %v1910_v23  ;;  %v2298_v38 = vpop.f32.mrb[82].mxu1 }
 0x3bc   : > { %v2457_v21 = vadd.f32 %v2393_v24, %v2295_v16  ;;  %v2299_v39 = vadd.f32 %v2298_v38, %v1915_v43  ;;  %v2300_v42 = vpop.f32.mrb[83].mxu1  ;;  %v2408_v16 = vld [vmem:[%s3681_s18 + $0x1b8] sm:$0xff]  ;;  %v1950_v38 = vpop.permute.xlu0 %1949 }
 0x3bd   : > { %v2458_v47 = vadd.f32 %v2394_v14, %v2297_v53  ;;  %v2301_v59 = vadd.f32 %v2300_v42, %v1915_v43 }
 0x3be   : > { %2521 = vst [vmem:[%s4471_s29 + $0x140] sm:$0xff] %v2457_v21  ;;  %v2459_v44 = vadd.f32 %v2395_v18, %v2299_v39  ;;  %v2409_v21 = vld [vmem:[%s3681_s18 + $0x1c0] sm:$0xff] }
 0x3bf   : > { %2522 = vst [vmem:[%s4471_s29 + $0x148] sm:$0xff] %v2458_v47  ;;  %v2460_v31 = vadd.f32 %v2396_v58, %v2301_v59  ;;  %v2410_v58 = vld [vmem:[%s3681_s18 + $0x1c8] sm:$0xff]  ;;  %v1955_v47 = vpop.permute.xlu1 %1954 }
 0x3c0   : > { %2523 = vst [vmem:[%s4471_s29 + $0x150] sm:$0xff] %v2459_v44 }
 0x3c1   : > { %2524 = vst [vmem:[%s4471_s29 + $0x158] sm:$0xff] %v2460_v31  ;;  %v2304_v49 = vpop.f32.mrb[84].mxu1  ;;  %v2411_v31 = vld [vmem:[%s3681_s18 + $0x1d0] sm:$0xff] }
 0x3c2   : > { %v2305_v52 = vadd.f32 %v2304_v49, %v1920_v62  ;;  %v2306_v8 = vpop.f32.mrb[85].mxu1 }
 0x3c3   : > { %v2307_v6 = vadd.f32 %v2306_v8, %v1920_v62  ;;  %v2308_v34 = vpop.f32.mrb[86].mxu1 }
 0x3c4   : > { %v2461_v56 = vadd.f32 %v2397_v61, %v2305_v52  ;;  %v2309_v60 = vadd.f32 %v2308_v34, %v1925_v32  ;;  %v2310_v15 = vpop.f32.mrb[87].mxu1  ;;  %v2412_v52 = vld [vmem:[%s3681_s18 + $0x1d8] sm:$0xff]  ;;  %v1960_v34 = vpop.permute.xlu0 %1959 }
 0x3c5   : > { %v2462_v17 = vadd.f32 %v2398_v11, %v2307_v6  ;;  %v2311_v50 = vadd.f32 %v2310_v15, %v1925_v32 }
 0x3c6   : > { %2525 = vst [vmem:[%s4471_s29 + $0x160] sm:$0xff] %v2461_v56  ;;  %v2463_v33 = vadd.f32 %v2399_v13, %v2309_v60  ;;  %v2413_v56 = vld [vmem:[%s3681_s18 + $0x1e0] sm:$0xff] }
 0x3c7   : > { %2526 = vst [vmem:[%s4471_s29 + $0x168] sm:$0xff] %v2462_v17  ;;  %v2464_v9 = vadd.f32 %v2400_v4, %v2311_v50  ;;  %v2414_v4 = vld [vmem:[%s3681_s18 + $0x1e8] sm:$0xff]  ;;  %v1965_v17 = vpop.permute.xlu1 %1964 }
 0x3c8   : > { %2527 = vst [vmem:[%s4471_s29 + $0x170] sm:$0xff] %v2463_v33 }
 0x3c9   : > { %2528 = vst [vmem:[%s4471_s29 + $0x178] sm:$0xff] %v2464_v9  ;;  %v2314_v54 = vpop.f32.mrb[88].mxu1  ;;  %v2415_v9 = vld [vmem:[%s3681_s18 + $0x1f0] sm:$0xff] }
 0x3ca   : > { %v2315_v48 = vadd.f32 %v2314_v54, %v1930_v51  ;;  %v2316_v35 = vpop.f32.mrb[89].mxu1 }
 0x3cb   : > { %v2317_v2 = vadd.f32 %v2316_v35, %v1930_v51  ;;  %v2318_v5 = vpop.f32.mrb[90].mxu1 }
 0x3cc   : > { %v2465_v55 = vadd.f32 %v2401_v28, %v2315_v48  ;;  %v2319_v25 = vadd.f32 %v2318_v5, %v1935_v3  ;;  %v2320_v41 = vpop.f32.mrb[91].mxu1  ;;  %v2416_v48 = vld [vmem:[%s3681_s18 + $0x1f8] sm:$0xff]  ;;  %s3331_s18 = scalar_lea.vmem %s4601_s8, 8192 }
 0x3cd   : > { %v2466_v63 = vadd.f32 %v2402_v27, %v2317_v2  ;;  %v2321_v45 = vadd.f32 %v2320_v41, %v1935_v3  ;;  %p3332_p4 = scmp.ne.s32.totalorder %s4601_s8, %s3331_s18  ;;  %p3339_p9 = scmp.lt.s32.totalorder %s3337_s28, %s3331_s18 }
 0x3ce   : > { %2529 = vst [vmem:[%s4471_s29 + $0x180] sm:$0xff] %v2465_v55  ;;  %v2467_v7 = vadd.f32 %v2403_v30, %v2319_v25 }
 0x3cf   : > { %2530 = vst [vmem:[%s4471_s29 + $0x188] sm:$0xff] %v2466_v63  ;;  %v2468_v1 = vadd.f32 %v2404_v46, %v2321_v45  ;;  %p3333_p1 = pnand %p3332_p4, %p4702_p5  ;;  %p3340_p6 = por %p3339_p9, %p3338_p0 }
 0x3d0   : > { %2531 = vst [vmem:[%s4471_s29 + $0x190] sm:$0xff] %v2467_v7 }
 0x3d1   : > { %2532 = vst [vmem:[%s4471_s29 + $0x198] sm:$0xff] %v2468_v1  ;;  %v2324_v26 = vpop.f32.mrb[92].mxu1  ;;  %p3334_p12 = pneg %p3333_p1 }
 0x3d2   : > { %v2325_v36 = vadd.f32 %v2324_v26, %v1940_v10  ;;  %v2326_v37 = vpop.f32.mrb[93].mxu1 }
 0x3d3   : > { %v2327_v0 = vadd.f32 %v2326_v37, %v1940_v10  ;;  %v2328_v20 = vpop.f32.mrb[94].mxu1  ;;  %p3341_p8 = pnand %p3340_p6, %p3334_p12 }
 0x3d4   : > { %v2469_v23 = vadd.f32 %v2405_v29, %v2325_v36  ;;  %v2329_v22 = vadd.f32 %v2328_v20, %v1945_v19  ;;  %v2330_v24 = vpop.f32.mrb[95].mxu1 }
 0x3d5   : > { %v2470_v40 = vadd.f32 %v2406_v12, %v2327_v0  ;;  %v2331_v14 = vadd.f32 %v2330_v24, %v1945_v19 }
 0x3d6   : > { %2533 = vst [vmem:[%s4471_s29 + $0x1a0] sm:$0xff] %v2469_v23  ;;  %v2471_v43 = vadd.f32 %v2407_v57, %v2329_v22 }
 0x3d7   : > { %2534 = vst [vmem:[%s4471_s29 + $0x1a8] sm:$0xff] %v2470_v40  ;;  %v2472_v53 = vadd.f32 %v2408_v16, %v2331_v14 }
 0x3d8   : > { %2535 = vst [vmem:[%s4471_s29 + $0x1b0] sm:$0xff] %v2471_v43 }
 0x3d9   : > { %2536 = vst [vmem:[%s4471_s29 + $0x1b8] sm:$0xff] %v2472_v53  ;;  %v2334_v18 = vpop.f32.mrb[96].mxu1 }
 0x3da   : > { %v2335_v39 = vadd.f32 %v2334_v18, %v1950_v38  ;;  %v2336_v42 = vpop.f32.mrb[97].mxu1 }
 0x3db   : > { %v2337_v59 = vadd.f32 %v2336_v42, %v1950_v38  ;;  %v2338_v44 = vpop.f32.mrb[98].mxu1 }
 0x3dc   : > { %v2473_v62 = vadd.f32 %v2409_v21, %v2335_v39  ;;  %v2339_v49 = vadd.f32 %v2338_v44, %v1955_v47  ;;  %v2340_v61 = vpop.f32.mrb[99].mxu1 }
 0x3dd   : > { %v2474_v8 = vadd.f32 %v2410_v58, %v2337_v59  ;;  %v2341_v11 = vadd.f32 %v2340_v61, %v1955_v47 }
 0x3de   : > { %2537 = vst [vmem:[%s4471_s29 + $0x1c0] sm:$0xff] %v2473_v62  ;;  %v2475_v32 = vadd.f32 %v2411_v31, %v2339_v49 }
 0x3df   : > { %2538 = vst [vmem:[%s4471_s29 + $0x1c8] sm:$0xff] %v2474_v8  ;;  %v2476_v6 = vadd.f32 %v2412_v52, %v2341_v11 }
 0x3e0   : > { %2539 = vst [vmem:[%s4471_s29 + $0x1d0] sm:$0xff] %v2475_v32 }
 0x3e1   : > { %2540 = vst [vmem:[%s4471_s29 + $0x1d8] sm:$0xff] %v2476_v6  ;;  %v2344_v13 = vpop.f32.mrb[100].mxu1 }
 0x3e2   : > { %v2345_v60 = vadd.f32 %v2344_v13, %v1960_v34  ;;  %v2346_v15 = vpop.f32.mrb[101].mxu1 }
 0x3e3   : > { %v2347_v50 = vadd.f32 %v2346_v15, %v1960_v34  ;;  %v2348_v33 = vpop.f32.mrb[102].mxu1 }
 0x3e4   : > { %v2477_v51 = vadd.f32 %v2413_v56, %v2345_v60  ;;  %v2349_v54 = vadd.f32 %v2348_v33, %v1965_v17  ;;  %v2350_v28 = vpop.f32.mrb[103].mxu1 }
 0x3e5   : > { %v2478_v35 = vadd.f32 %v2414_v4, %v2347_v50  ;;  %v2351_v27 = vadd.f32 %v2350_v28, %v1965_v17 }
 0x3e6   : > { %2541 = vst [vmem:[%s4471_s29 + $0x1e0] sm:$0xff] %v2477_v51  ;;  %v2479_v3 = vadd.f32 %v2415_v9, %v2349_v54 }
 0x3e7   : > { %2542 = vst [vmem:[%s4471_s29 + $0x1e8] sm:$0xff] %v2478_v35  ;;  %v2480_v2 = vadd.f32 %v2416_v48, %v2351_v27 }
 0x3e8   : > { %2543 = vst [vmem:[%s4471_s29 + $0x1f0] sm:$0xff] %v2479_v3 }
 0x3e9   : > { %2544 = vst [vmem:[%s4471_s29 + $0x1f8] sm:$0xff] %v2480_v2 }
 0x3ea   : > { %3344 = shalt.err (!%p3341_p8)
}
 0x3eb   : > { %s3345_s25 = scalar_lea.hbm %s4599_s14, 8192  ;;  %s3349_s9 = scalar_lea.hbm %s4659_s6, 16384 }
 0x3ec   : > { %p3346_p10 = scmp.ne.s32.totalorder %s4599_s14, %s3345_s25  ;;  %p3350_p3 = scmp.lt.u32.totalorder %s4599_s14, %s4659_s6 }
 0x3ed   : > { %p3351_p11 = scmp.lt.u32.totalorder %s3349_s9, %s3345_s25  ;;  %p3353_p4 = scmp.lt.u32.totalorder %s3345_s25, %s4599_s14 }
 0x3ee   : > { %p3347_p13 = pnand %p3346_p10, %p4702_p5 }
 0x3ef   : > { %p3352_p2 = por %p3351_p11, %p3350_p3 }
 0x3f0   : > { %p3348_p7 = pneg %p3347_p13 }
 0x3f1   : > { %p3354_p1 = por %p3353_p4, %p3352_p2 }
 0x3f3   : > { %p3355_p12 = pnand %p3354_p1, %p3348_p7 }
 0x3f5   : > { %3358 = shalt.err (!%p3355_p12)
}
 0x3f6   : > { %s3432_s17 = smov 256   ;;  %s3433_s20 = smov 16  }
 0x3f7   : > { %3008 = dma.vmem_to_hbm [thread:$0]  (%p4702_p5), %s4601_s8, 8192, %s4599_s14, %s2546_s24, %s3432_s17, %s3432_s17, %s3433_s20  }
 0x3f8 PF: > { %s2576_s29 = sand.u32 1, %s3401_s21   ;;  %p4703_p0 = scmp.ne.s32.totalorder %s4684_s16, 0 }
 0x3f9   : > { %p4704_p9 = scmp.ge.s32.totalorder %s3421_s26, 2  ;;  %s2577_s0 = scalar_lea.sflag [#allocation4], %s2576_s29 }
 0x3fb   : > { %p3022_p6 = pnand %p4704_p9, %p4703_p0 }
 0x3fd   : > { %3396 = dma.done.wait (!%p3022_p6), %s2577_s0, 8192  }
 0x3fe   : > { %3398 = vsyncadd (!%p3022_p6), %s2577_s0, 4294959104  ;;  %s23_s26 = sadd.s32 1, %s3421_s26   ;;  %s4705_s12 = sld [smem:[#allocation13_spill]] }
 0x3ff   : > { %p20_p8 = scmp.ge.s32.totalorder %s23_s26, 4   ;;  %s4706_s23 = sld [smem:[#allocation16_spill]] }
 0x400   : > { %s4707_s24 = sld [smem:[#allocation14_spill]]  ;;  %s4708_s25 = sld [smem:[#allocation15_spill]] }
 0x401   : > { %s4709_s21 = smov %s3405_s22  ;;  %22 = sbr.rel (!%p20_p8) target bundleno = 9 (0x9), region = 104 }
 0x404   : > { %s4710_s22 = smov %s4705_s12 }
 0x408   :  { %2582 = vsyncpa [#allocation3], 1 }
 0x409   :  { %2584 = vsyncpa [#allocation3 + $0x1], 1 }
 0x40a   :  { %2585 = vsyncpa [#allocation6], 1 }
 0x40b   :  { %2586 = vsyncpa [#allocation4], 1 }
 0x40c   :  { %2588 = vsyncpa [#allocation4 + $0x1], 1 }

</bundles_post_ra>
